<compile_context>
chip_gen: v7x
topology: tpu7x:2x2x1
jax: 0.10.0
libtpu: 0.0.40
codegen_flags: <defaults>
</compile_context>

<pallas_src>
import functools
import math

import jax
import jax.numpy as jnp
from jax.experimental import pallas as pl
from jax.experimental.pallas import tpu as pltpu


def _resblock_kernel(n_head, NB, Lp,
                     x_ref, mask_ref,
                     w_qkv_ref, b_qkv_ref,
                     w_out_ref, b_out_ref,
                     w_fc_ref, b_fc_ref,
                     w_proj_ref, b_proj_ref,
                     o_ref,
                     carry_ref, qkv_ref, attn_ref):
    """One ResidualAttentionBlock step of the (batch_group, layer) grid.

    x_ref: (NB*Lp, D) slab holding NB batch elements.  Weight refs are the current
    layer's weights, already pre-transposed to right-multiply layout, LN/scale-folded
    and stored in bf16.  carry_ref holds the f32 residual stream across the layer
    grid axis; qkv_ref stages the bf16 QKV activations for per-head slicing;
    attn_ref accumulates the attention output lane-densely (full D-wide stores).
    """
    layer = pl.program_id(1)
    bf16 = jnp.bfloat16
    eps = 1e-5

    @pl.when(layer == 0)
    def _():
        carry_ref[...] = x_ref[...].astype(jnp.float32)

    x = carry_ref[...]                      # (NB*Lp, D) f32 residual stream
    R, D = x.shape
    Dh = D // n_head

    def normalize(v):                       # fp32 LayerNorm; affine folded into weights
        mu = jnp.mean(v, axis=-1, keepdims=True)
        var = jnp.mean((v - mu) ** 2, axis=-1, keepdims=True)
        return (v - mu) * jax.lax.rsqrt(var + eps)

    # ---------------- attention branch ----------------
    h = normalize(x)
    qkv = jnp.dot(h.astype(bf16), w_qkv_ref[...],
                  preferred_element_type=jnp.float32) + b_qkv_ref[...]
    qkv_ref[...] = qkv.astype(bf16)         # lane-dense full-width staging store
    mask = mask_ref[...]                    # additive float mask, (Lp, Lp)

    # residual + out-proj bias; per-head contributions accumulate on top.
    attn_ref[...] = x + b_out_ref[...]

    # TODO(synk): nn.MultiheadAttention dropout(p=0.1) is skipped (inference mode).
    for hd in range(n_head):                # static offsets -> no dynamic lane slicing
        w_out_h = w_out_ref[hd * Dh:(hd + 1) * Dh, :]            # (Dh, D) bf16
        for nb in range(NB):
            r0 = nb * Lp
            q_h = qkv_ref[r0:r0 + Lp, hd * Dh:(hd + 1) * Dh]
            k_h = qkv_ref[r0:r0 + Lp, D + hd * Dh:D + (hd + 1) * Dh]
            v_h = qkv_ref[r0:r0 + Lp, 2 * D + hd * Dh:2 * D + (hd + 1) * Dh]
            # q @ k^T without materializing a transpose (contract dim 1 of both);
            # 1/sqrt(Dh) is already folded into the Q projection.
            s = jax.lax.dot_general(q_h, k_h, (((1,), (1,)), ((), ())),
                                    preferred_element_type=jnp.float32)
            s = s + mask
            s = s - jnp.max(s, axis=-1, keepdims=True)
            p = jnp.exp(s)
            p = p * pl.reciprocal(jnp.sum(p, axis=-1, keepdims=True), approx=True)
            ctx = jnp.dot(p.astype(bf16), v_h, preferred_element_type=jnp.float32)
            # Lane-dense accumulate: (Lp, Dh) @ (Dh, D) -> full-width (Lp, D) store.
            attn_ref[r0:r0 + Lp, :] += jnp.dot(ctx.astype(bf16), w_out_h,
                                               preferred_element_type=jnp.float32)

    x = attn_ref[...]

    # ---------------- MLP branch ----------------
    h2 = normalize(x)
    y = jnp.dot(h2.astype(bf16), w_fc_ref[...],
                preferred_element_type=jnp.float32) + b_fc_ref[...]
    y = y * jax.nn.sigmoid(1.702 * y)       # QuickGELU in f32
    y = jnp.dot(y.astype(bf16), w_proj_ref[...],
                preferred_element_type=jnp.float32) + b_proj_ref[...]
    x = x + y

    carry_ref[...] = x

    @pl.when(layer == pl.num_programs(1) - 1)
    def _():
        o_ref[...] = x.astype(o_ref.dtype)


def _vmem_limit_bytes(R, Lp, D):
    """Per-step VMEM estimate with margin, clamped to the chip's physical VMEM."""
    mib = 1 << 20
    weights = 2 * (12 * D * D * 2 + 9 * D * 4)        # double-buffered bf16 weights + f32 biases
    io = 2 * 2 * (R * D * 4) + 2 * (Lp * Lp * 4)      # x/out blocks (double-buffered) + mask
    scratch = R * D * 4 + R * 3 * D * 2 + R * D * 4   # residual carry + qkv staging + attn acc
    temps = 3 * R * 4 * D * 4 + 2 * R * 3 * D * 4 + 6 * Lp * Lp * 4
    est = weights + io + scratch + temps
    try:
        cap = int(pltpu.get_tpu_info().vmem_capacity_bytes)   # 64 MiB on v7x, 128 on v5e/v6e
    except Exception:
        cap = 64 * mib
    return int(min(max(int(est * 1.3), 32 * mib), int(0.85 * cap)))


def _transformer_blocks(x_grd, mask, params, n_head, NB, Lp):
    """x_grd: (G, NB*Lp, D) -> (G, NB*Lp, D); runs ALL layers inside one pallas_call."""
    G, R, D = x_grd.shape
    n_layers = params["w_qkv"].shape[0]

    def wspec(shape):                         # per-layer block, indexed by layer axis
        nd = len(shape)
        return pl.BlockSpec((None,) + shape,
                            lambda g, l, _nd=nd: (l,) + (0,) * _nd)

    in_specs = [
        pl.BlockSpec((None, R, D), lambda g, l: (g, 0, 0)),    # x (NB-batch slab)
        pl.BlockSpec((Lp, Lp), lambda g, l: (0, 0)),           # additive attention mask
        wspec((D, 3 * D)), wspec((1, 3 * D)),                  # in_proj (folded) / bias
        wspec((D, D)), wspec((1, D)),                          # out_proj / bias
        wspec((D, 4 * D)), wspec((1, 4 * D)),                  # mlp.c_fc (folded) / bias
        wspec((4 * D, D)), wspec((1, D)),                      # mlp.c_proj / bias
    ]
    out_spec = pl.BlockSpec((None, R, D), lambda g, l: (g, 0, 0))

    kernel = functools.partial(_resblock_kernel, n_head, NB, Lp)
    return pl.pallas_call(
        kernel,
        out_shape=jax.ShapeDtypeStruct((G, R, D), x_grd.dtype),
        grid_spec=pltpu.PrefetchScalarGridSpec(
            num_scalar_prefetch=0,
            grid=(G, n_layers),
            in_specs=in_specs,
            out_specs=out_spec,
            scratch_shapes=[pltpu.VMEM((R, D), jnp.float32),       # residual-stream carry
                            pltpu.VMEM((R, 3 * D), jnp.bfloat16),  # qkv staging
                            pltpu.VMEM((R, D), jnp.float32)],      # attention accumulator
        ),
        compiler_params=pltpu.CompilerParams(
            dimension_semantics=("parallel", "arbitrary"),
            vmem_limit_bytes=_vmem_limit_bytes(R, Lp, D),
        ),
    )(x_grd, mask,
      params["w_qkv"], params["b_qkv"],
      params["w_out"], params["b_out"],
      params["w_fc"], params["b_fc"],
      params["w_proj"], params["b_proj"])


def transformer_forward(x_lnd, params, n_head, text_mask=None, batch_block=4):
    """Matches Transformer.forward: x is (L, N, D); blocks applied sequentially.

    `params` is the stacked / pre-transposed / folded / bf16 dict from prepare_params().
    (torch.utils.checkpoint only changes the backward pass; forward is identical.)
    batch_block (NB) batch elements share each per-layer weight fetch; lower it for
    very large D on v7x (64 MiB VMEM).
    """
    L, N, D = x_lnd.shape

    # Pad the sequence so (Lp, Lp) score tiles and (Lp, D) slabs are sublane/lane dense.
    mult = 128 if L > 64 else 8
    Lp = -(-L // mult) * mult

    NB = max(1, min(batch_block, N))
    G = -(-N // NB)
    Np = G * NB

    if text_mask is None:
        mask = jnp.zeros((L, L), jnp.float32)
    else:
        mask = text_mask.astype(jnp.float32)
    mask_p = jnp.zeros((Lp, Lp), jnp.float32).at[:L, :L].set(mask)
    if Lp != L:
        mask_p = mask_p.at[:, L:].set(-1e30)     # padded keys are never attended to

    x = jnp.transpose(x_lnd, (1, 0, 2))          # (N, L, D)
    x = jnp.pad(x, ((0, Np - N), (0, Lp - L), (0, 0)))
    x = x.reshape(G, NB * Lp, D)                 # NB sequences stacked per grid step

    out = _transformer_blocks(x, mask_p, params, n_head, NB=NB, Lp=Lp)
    out = out.reshape(Np, Lp, D)[:N, :L, :]
    return jnp.transpose(out, (1, 0, 2))         # back to (L, N, D)


def init_params(key, width, layers):
    """Per-layer parameter dicts in the PyTorch (nn.Module) layout, fp32.
    LN params are randomized (not identity) so the weight-folding path is exercised."""
    D = width
    s = 0.02
    params = []
    for _ in range(layers):
        key, k0, k1, k2, k3, k4, k5, k6, k7, k8, k9, k10, k11 = jax.random.split(key, 13)
        params.append(dict(
            ln1_g=1.0 + 0.1 * jax.random.normal(k8, (1, D), jnp.float32),
            ln1_b=0.1 * jax.random.normal(k9, (1, D), jnp.float32),
            w_qkv=s * jax.random.normal(k0, (3 * D, D), jnp.float32),
            b_qkv=s * jax.random.normal(k1, (1, 3 * D), jnp.float32),
            w_out=s * jax.random.normal(k2, (D, D), jnp.float32),
            b_out=s * jax.random.normal(k3, (1, D), jnp.float32),
            ln2_g=1.0 + 0.1 * jax.random.normal(k10, (1, D), jnp.float32),
            ln2_b=0.1 * jax.random.normal(k11, (1, D), jnp.float32),
            w_fc=s * jax.random.normal(k4, (4 * D, D), jnp.float32),
            b_fc=s * jax.random.normal(k5, (1, 4 * D), jnp.float32),
            w_proj=s * jax.random.normal(k6, (D, 4 * D), jnp.float32),
            b_proj=s * jax.random.normal(k7, (1, D), jnp.float32),
        ))
    return params


def prepare_params(params_list, n_head, compute_dtype=jnp.bfloat16):
    """Stack per-layer params, pre-transpose matmul weights to right-multiply layout,
    fold LN affine params and the 1/sqrt(Dh) softmax scale into the adjacent matmuls
    (all in f32), then cast the big weights to the MXU compute dtype.  Done ONCE
    outside the kernel."""
    D = params_list[0]["w_qkv"].shape[1]
    Dh = D // n_head
    scale = 1.0 / math.sqrt(Dh)

    def stack(name):
        return jnp.stack([p[name] for p in params_list], axis=0).astype(jnp.float32)

    w_qkv = jnp.transpose(stack("w_qkv"), (0, 2, 1))     # (Lyr, D, 3D)
    w_out = jnp.transpose(stack("w_out"), (0, 2, 1))     # (Lyr, D, D)
    w_fc = jnp.transpose(stack("w_fc"), (0, 2, 1))       # (Lyr, D, 4D)
    w_proj = jnp.transpose(stack("w_proj"), (0, 2, 1))   # (Lyr, 4D, D)

    b_qkv, b_out = stack("b_qkv"), stack("b_out")
    b_fc, b_proj = stack("b_fc"), stack("b_proj")
    ln1_g, ln1_b = stack("ln1_g"), stack("ln1_b")
    ln2_g, ln2_b = stack("ln2_g"), stack("ln2_b")

    # Fold LN affine into the next matmul (LN output feeds only that matmul):
    #   (xn*g + b) @ W + c == xn @ (diag(g) @ W) + (b @ W + c)
    b_qkv = b_qkv + jnp.einsum("lrd,ldo->lro", ln1_b, w_qkv)
    w_qkv = w_qkv * jnp.transpose(ln1_g, (0, 2, 1))
    b_fc = b_fc + jnp.einsum("lrd,ldo->lro", ln2_b, w_fc)
    w_fc = w_fc * jnp.transpose(ln2_g, (0, 2, 1))

    # Fold the 1/sqrt(Dh) softmax scale into the Q projection (first D output cols).
    q_scale = jnp.concatenate([jnp.full((D,), scale, jnp.float32),
                               jnp.ones((2 * D,), jnp.float32)])
    w_qkv = w_qkv * q_scale[None, None, :]
    b_qkv = b_qkv * q_scale[None, None, :]

    # TODO(synk): optional fp8 (v7x) / int8 (v6e) weight storage would halve the
    # binding HBM traffic; kept bf16 pending accuracy sign-off.
    return dict(
        w_qkv=w_qkv.astype(compute_dtype), b_qkv=b_qkv,
        w_out=w_out.astype(compute_dtype), b_out=b_out,
        w_fc=w_fc.astype(compute_dtype), b_fc=b_fc,
        w_proj=w_proj.astype(compute_dtype), b_proj=b_proj,
    )


def _ref_block(x, mask, p, n_head):
    """Pure-JAX f32 reference for one block (x: (N, L, D)), PyTorch weight layout."""
    def ln(v, g, b):
        mu = v.mean(-1, keepdims=True)
        var = ((v - mu) ** 2).mean(-1, keepdims=True)
        return (v - mu) / jnp.sqrt(var + 1e-5) * g + b

    N, L, D = x.shape
    Dh = D // n_head
    h = ln(x, p["ln1_g"], p["ln1_b"])
    qkv = h @ p["w_qkv"].T + p["b_qkv"]
    q, k, v = qkv[..., :D], qkv[..., D:2 * D], qkv[..., 2 * D:]
    q = q.reshape(N, L, n_head, Dh).transpose(0, 2, 1, 3)
    k = k.reshape(N, L, n_head, Dh).transpose(0, 2, 1, 3)
    v = v.reshape(N, L, n_head, Dh).transpose(0, 2, 1, 3)
    s = q @ jnp.swapaxes(k, -1, -2) / math.sqrt(Dh) + mask
    pa = jax.nn.softmax(s, axis=-1)
    ctx = (pa @ v).transpose(0, 2, 1, 3).reshape(N, L, D)
    x = x + ctx @ p["w_out"].T + p["b_out"]
    h2 = ln(x, p["ln2_g"], p["ln2_b"])
    y = h2 @ p["w_fc"].T + p["b_fc"]
    y = y * jax.nn.sigmoid(1.702 * y)
    return x + y @ p["w_proj"].T + p["b_proj"]


if __name__ == "__main__":
    width, layers, heads = 32, 2, 4
    L, N = 8, 2

    key = jax.random.PRNGKey(0)
    kx, kp = jax.random.split(key)
    x = jax.random.normal(kx, (L, N, width), jnp.float32)
    params_list = init_params(kp, width, layers)
    prepped = prepare_params(params_list, heads)   # stack + transpose + fold + bf16 cast

    def ref_forward(x_lnd, mask):
        m = jnp.zeros((L, L), jnp.float32) if mask is None else mask.astype(jnp.float32)
        r = jnp.transpose(x_lnd, (1, 0, 2))
        for p in params_list:
            r = _ref_block(r, m, p, heads)
        return jnp.transpose(r, (1, 0, 2))

    # --- no mask ---
    out = jax.block_until_ready(transformer_forward(x, prepped, heads, text_mask=None))
    ref = ref_forward(x, None)
    assert out.shape == (L, N, width)
    # bf16 matmul operands (f32 accumulation) + approx reciprocal vs f32 reference.
    assert jnp.allclose(out, ref, atol=1e-2, rtol=1e-2), "mismatch vs reference (no mask)"

    # --- causal text mask (exercises the additive-mask path) ---
    causal = jnp.where(jnp.arange(L)[None, :] <= jnp.arange(L)[:, None],
                       0.0, -1e9).astype(jnp.float32)
    out_c = jax.block_until_ready(transformer_forward(x, prepped, heads, text_mask=causal))
    ref_c = ref_forward(x, causal)
    assert jnp.allclose(out_c, ref_c, atol=1e-2, rtol=1e-2), "mismatch vs reference (causal)"

    print("KERNEL_OK")
</pallas_src>

<mosaic_0001>
module attributes {stable_mosaic.version = 11 : i64} {
  func.func @_resblock_kernel(%arg0: i32, %arg1: i32, %arg2: memref<1x16x32xf32, #tpu.memory_space<vmem>>, %arg3: memref<8x8xf32, #tpu.memory_space<vmem>>, %arg4: memref<1x32x96xbf16, #tpu.memory_space<vmem>>, %arg5: memref<1x1x96xf32, #tpu.memory_space<vmem>>, %arg6: memref<1x32x32xbf16, #tpu.memory_space<vmem>>, %arg7: memref<1x1x32xf32, #tpu.memory_space<vmem>>, %arg8: memref<1x32x128xbf16, #tpu.memory_space<vmem>>, %arg9: memref<1x1x128xf32, #tpu.memory_space<vmem>>, %arg10: memref<1x128x32xbf16, #tpu.memory_space<vmem>>, %arg11: memref<1x1x32xf32, #tpu.memory_space<vmem>>, %arg12: memref<1x16x32xf32, #tpu.memory_space<vmem>>, %arg13: memref<16x32xf32, #tpu.memory_space<vmem>>, %arg14: memref<16x96xbf16, #tpu.memory_space<vmem>>, %arg15: memref<16x32xf32, #tpu.memory_space<vmem>>) attributes {dimension_semantics = [#tpu.dimension_semantics<parallel>, #tpu.dimension_semantics<arbitrary>], iteration_bounds = array<i64: 1, 2>, scalar_prefetch = 0 : i64, scratch_operands = 3 : i64, tpu.core_type = #tpu.core_type<tc>, window_params = [{transform_indices = @transform_0, window_bounds = array<i64: 1, 16, 32>}, {pipeline_mode = #tpu.pipeline_mode<synchronous>, transform_indices = @transform_1, window_bounds = array<i64: 8, 8>}, {transform_indices = @transform_2, window_bounds = array<i64: 1, 32, 96>}, {transform_indices = @transform_3, window_bounds = array<i64: 1, 1, 96>}, {transform_indices = @transform_4, window_bounds = array<i64: 1, 32, 32>}, {transform_indices = @transform_5, window_bounds = array<i64: 1, 1, 32>}, {transform_indices = @transform_6, window_bounds = array<i64: 1, 32, 128>}, {transform_indices = @transform_7, window_bounds = array<i64: 1, 1, 128>}, {transform_indices = @transform_8, window_bounds = array<i64: 1, 128, 32>}, {transform_indices = @transform_9, window_bounds = array<i64: 1, 1, 32>}, {transform_indices = @transform_10, window_bounds = array<i64: 1, 16, 32>}]} {
    %c0_i32 = arith.constant 0 : i32
    %0 = arith.cmpi eq, %arg1, %c0_i32 : i32
    %1 = arith.extui %0 : i1 to i32
    %c0_i32_0 = arith.constant 0 : i32
    %2 = arith.cmpi ne, %1, %c0_i32_0 : i32
    scf.if %2 {
      %c0_169 = arith.constant 0 : index
      %c0_170 = arith.constant 0 : index
      %c0_171 = arith.constant 0 : index
      %270 = vector.load %arg2[%c0_169, %c0_170, %c0_171] : memref<1x16x32xf32, #tpu.memory_space<vmem>>, vector<1x16x32xf32>
      %271 = vector.shape_cast %270 : vector<1x16x32xf32> to vector<16x32xf32>
      %c0_172 = arith.constant 0 : index
      %c0_173 = arith.constant 0 : index
      %272 = vector.load %arg13[%c0_172, %c0_173] : memref<16x32xf32, #tpu.memory_space<vmem>>, vector<16x32xf32>
      tpu.vector_store %arg13[%c0_172, %c0_173], %271 {strides = array<i32>} : memref<16x32xf32, #tpu.memory_space<vmem>>, vector<16x32xf32>,
    } else {
    }
    %c0 = arith.constant 0 : index
    %c0_1 = arith.constant 0 : index
    %3 = vector.load %arg13[%c0, %c0_1] : memref<16x32xf32, #tpu.memory_space<vmem>>, vector<16x32xf32>
    %cst = arith.constant dense<0.000000e+00> : vector<16xf32>
    %4 = vector.multi_reduction <add>, %3, %cst [1] : vector<16x32xf32> to vector<16xf32>
    %5 = vector.shape_cast %4 : vector<16xf32> to vector<16x1xf32>
    %cst_2 = arith.constant 3.200000e+01 : f32
    %6 = vector.broadcast %cst_2 : f32 to vector<16x1xf32>
    %7 = arith.divf %5, %6 : vector<16x1xf32>
    %8 = vector.broadcast %7 : vector<16x1xf32> to vector<16x32xf32>
    %9 = arith.subf %3, %8 : vector<16x32xf32>
    %10 = arith.mulf %9, %9 : vector<16x32xf32>
    %cst_3 = arith.constant dense<0.000000e+00> : vector<16xf32>
    %11 = vector.multi_reduction <add>, %10, %cst_3 [1] : vector<16x32xf32> to vector<16xf32>
    %12 = vector.shape_cast %11 : vector<16xf32> to vector<16x1xf32>
    %cst_4 = arith.constant 3.200000e+01 : f32
    %13 = vector.broadcast %cst_4 : f32 to vector<16x1xf32>
    %14 = arith.divf %12, %13 : vector<16x1xf32>
    %15 = vector.broadcast %7 : vector<16x1xf32> to vector<16x32xf32>
    %16 = arith.subf %3, %15 : vector<16x32xf32>
    %cst_5 = arith.constant 9.99999974E-6 : f32
    %17 = vector.broadcast %cst_5 : f32 to vector<16x1xf32>
    %18 = arith.addf %14, %17 : vector<16x1xf32>
    %19 = math.rsqrt %18 : vector<16x1xf32>
    %20 = vector.broadcast %19 : vector<16x1xf32> to vector<16x32xf32>
    %21 = arith.mulf %16, %20 : vector<16x32xf32>
    %22 = arith.truncf %21 : vector<16x32xf32> to vector<16x32xbf16>
    %c0_6 = arith.constant 0 : index
    %c0_7 = arith.constant 0 : index
    %c0_8 = arith.constant 0 : index
    %23 = vector.load %arg4[%c0_6, %c0_7, %c0_8] : memref<1x32x96xbf16, #tpu.memory_space<vmem>>, vector<1x32x96xbf16>
    %24 = vector.shape_cast %23 : vector<1x32x96xbf16> to vector<32x96xbf16>
    %cst_9 = arith.constant dense<0.000000e+00> : vector<16x96xf32>
    %25 = tpu.matmul %22, %24, %cst_9 {dimension_numbers = #tpu.dot_dimension_numbers<[1], [0], [0], [1], [0, 0, 1, 1], [], []>} : vector<16x32xbf16>, vector<32x96xbf16>, vector<16x96xf32> -> vector<16x96xf32>
    %c0_10 = arith.constant 0 : index
    %c0_11 = arith.constant 0 : index
    %c0_12 = arith.constant 0 : index
    %26 = vector.load %arg5[%c0_10, %c0_11, %c0_12] : memref<1x1x96xf32, #tpu.memory_space<vmem>>, vector<1x1x96xf32>
    %27 = vector.shape_cast %26 : vector<1x1x96xf32> to vector<1x96xf32>
    %28 = vector.broadcast %27 : vector<1x96xf32> to vector<16x96xf32>
    %29 = arith.addf %25, %28 : vector<16x96xf32>
    %30 = arith.truncf %29 : vector<16x96xf32> to vector<16x96xbf16>
    %c0_13 = arith.constant 0 : index
    %c0_14 = arith.constant 0 : index
    %31 = vector.load %arg14[%c0_13, %c0_14] : memref<16x96xbf16, #tpu.memory_space<vmem>>, vector<16x96xbf16>
    tpu.vector_store %arg14[%c0_13, %c0_14], %30 {strides = array<i32>} : memref<16x96xbf16, #tpu.memory_space<vmem>>, vector<16x96xbf16>,
    %c0_15 = arith.constant 0 : index
    %c0_16 = arith.constant 0 : index
    %32 = vector.load %arg3[%c0_15, %c0_16] : memref<8x8xf32, #tpu.memory_space<vmem>>, vector<8x8xf32>
    %c0_17 = arith.constant 0 : index
    %c0_18 = arith.constant 0 : index
    %c0_19 = arith.constant 0 : index
    %33 = vector.load %arg7[%c0_17, %c0_18, %c0_19] : memref<1x1x32xf32, #tpu.memory_space<vmem>>, vector<1x1x32xf32>
    %34 = vector.shape_cast %33 : vector<1x1x32xf32> to vector<1x32xf32>
    %35 = vector.broadcast %34 : vector<1x32xf32> to vector<16x32xf32>
    %36 = arith.addf %3, %35 : vector<16x32xf32>
    %c0_20 = arith.constant 0 : index
    %c0_21 = arith.constant 0 : index
    %37 = vector.load %arg15[%c0_20, %c0_21] : memref<16x32xf32, #tpu.memory_space<vmem>>, vector<16x32xf32>
    tpu.vector_store %arg15[%c0_20, %c0_21], %36 {strides = array<i32>} : memref<16x32xf32, #tpu.memory_space<vmem>>, vector<16x32xf32>,
    %c0_22 = arith.constant 0 : index
    %c0_23 = arith.constant 0 : index
    %c0_24 = arith.constant 0 : index
    %38 = vector.load %arg6[%c0_22, %c0_23, %c0_24] : memref<1x32x32xbf16, #tpu.memory_space<vmem>>, vector<1x8x32xbf16>
    %39 = vector.shape_cast %38 : vector<1x8x32xbf16> to vector<8x32xbf16>
    %c0_25 = arith.constant 0 : index
    %c0_26 = arith.constant 0 : index
    %40 = vector.load %arg14[%c0_25, %c0_26] : memref<16x96xbf16, #tpu.memory_space<vmem>>, vector<8x8xbf16>
    %c0_27 = arith.constant 0 : index
    %c32 = arith.constant 32 : index
    %41 = vector.load %arg14[%c0_27, %c32] : memref<16x96xbf16, #tpu.memory_space<vmem>>, vector<8x8xbf16>
    %c0_28 = arith.constant 0 : index
    %c64 = arith.constant 64 : index
    %42 = vector.load %arg14[%c0_28, %c64] : memref<16x96xbf16, #tpu.memory_space<vmem>>, vector<8x8xbf16>
    %cst_29 = arith.constant dense<0.000000e+00> : vector<8x8xf32>
    %43 = tpu.matmul %40, %41, %cst_29 {dimension_numbers = #tpu.dot_dimension_numbers<[1], [1], [0], [0], [0, 0, 1, 0], [], []>} : vector<8x8xbf16>, vector<8x8xbf16>, vector<8x8xf32> -> vector<8x8xf32>
    %44 = arith.addf %43, %32 : vector<8x8xf32>
    %cst_30 = arith.constant dense<0xFF800000> : vector<8xf32>
    %45 = vector.multi_reduction <maximumf>, %44, %cst_30 [1] : vector<8x8xf32> to vector<8xf32>
    %46 = vector.shape_cast %45 : vector<8xf32> to vector<8x1xf32>
    %47 = vector.broadcast %46 : vector<8x1xf32> to vector<8x8xf32>
    %48 = arith.subf %44, %47 : vector<8x8xf32>
    %49 = math.exp %48 : vector<8x8xf32>
    %cst_31 = arith.constant dense<0.000000e+00> : vector<8xf32>
    %50 = vector.multi_reduction <add>, %49, %cst_31 [1] : vector<8x8xf32> to vector<8xf32>
    %51 = vector.shape_cast %50 : vector<8xf32> to vector<8x1xf32>
    %52 = tpu.reciprocal %51 {approx = true} : vector<8x1xf32> -> vector<8x1xf32>
    %53 = vector.broadcast %52 : vector<8x1xf32> to vector<8x8xf32>
    %54 = arith.mulf %49, %53 : vector<8x8xf32>
    %55 = arith.truncf %54 : vector<8x8xf32> to vector<8x8xbf16>
    %cst_32 = arith.constant dense<0.000000e+00> : vector<8x8xf32>
    %56 = tpu.matmul %55, %42, %cst_32 {dimension_numbers = #tpu.dot_dimension_numbers<[1], [0], [0], [1], [0, 0, 1, 1], [], []>} : vector<8x8xbf16>, vector<8x8xbf16>, vector<8x8xf32> -> vector<8x8xf32>
    %c0_33 = arith.constant 0 : index
    %c0_34 = arith.constant 0 : index
    %57 = vector.load %arg15[%c0_33, %c0_34] : memref<16x32xf32, #tpu.memory_space<vmem>>, vector<8x32xf32>
    %58 = arith.truncf %56 : vector<8x8xf32> to vector<8x8xbf16>
    %cst_35 = arith.constant dense<0.000000e+00> : vector<8x32xf32>
    %59 = tpu.matmul %58, %39, %cst_35 {dimension_numbers = #tpu.dot_dimension_numbers<[1], [0], [0], [1], [0, 0, 1, 1], [], []>} : vector<8x8xbf16>, vector<8x32xbf16>, vector<8x32xf32> -> vector<8x32xf32>
    %60 = arith.addf %57, %59 : vector<8x32xf32>
    %c0_36 = arith.constant 0 : index
    %c0_37 = arith.constant 0 : index
    %61 = vector.load %arg15[%c0_36, %c0_37] : memref<16x32xf32, #tpu.memory_space<vmem>>, vector<8x32xf32>
    tpu.vector_store %arg15[%c0_36, %c0_37], %60 {strides = array<i32>} : memref<16x32xf32, #tpu.memory_space<vmem>>, vector<8x32xf32>,
    %c8 = arith.constant 8 : index
    %c0_38 = arith.constant 0 : index
    %62 = vector.load %arg14[%c8, %c0_38] : memref<16x96xbf16, #tpu.memory_space<vmem>>, vector<8x8xbf16>
    %c8_39 = arith.constant 8 : index
    %c32_40 = arith.constant 32 : index
    %63 = vector.load %arg14[%c8_39, %c32_40] : memref<16x96xbf16, #tpu.memory_space<vmem>>, vector<8x8xbf16>
    %c8_41 = arith.constant 8 : index
    %c64_42 = arith.constant 64 : index
    %64 = vector.load %arg14[%c8_41, %c64_42] : memref<16x96xbf16, #tpu.memory_space<vmem>>, vector<8x8xbf16>
    %cst_43 = arith.constant dense<0.000000e+00> : vector<8x8xf32>
    %65 = tpu.matmul %62, %63, %cst_43 {dimension_numbers = #tpu.dot_dimension_numbers<[1], [1], [0], [0], [0, 0, 1, 0], [], []>} : vector<8x8xbf16>, vector<8x8xbf16>, vector<8x8xf32> -> vector<8x8xf32>
    %66 = arith.addf %65, %32 : vector<8x8xf32>
    %cst_44 = arith.constant dense<0xFF800000> : vector<8xf32>
    %67 = vector.multi_reduction <maximumf>, %66, %cst_44 [1] : vector<8x8xf32> to vector<8xf32>
    %68 = vector.shape_cast %67 : vector<8xf32> to vector<8x1xf32>
    %69 = vector.broadcast %68 : vector<8x1xf32> to vector<8x8xf32>
    %70 = arith.subf %66, %69 : vector<8x8xf32>
    %71 = math.exp %70 : vector<8x8xf32>
    %cst_45 = arith.constant dense<0.000000e+00> : vector<8xf32>
    %72 = vector.multi_reduction <add>, %71, %cst_45 [1] : vector<8x8xf32> to vector<8xf32>
    %73 = vector.shape_cast %72 : vector<8xf32> to vector<8x1xf32>
    %74 = tpu.reciprocal %73 {approx = true} : vector<8x1xf32> -> vector<8x1xf32>
    %75 = vector.broadcast %74 : vector<8x1xf32> to vector<8x8xf32>
    %76 = arith.mulf %71, %75 : vector<8x8xf32>
    %77 = arith.truncf %76 : vector<8x8xf32> to vector<8x8xbf16>
    %cst_46 = arith.constant dense<0.000000e+00> : vector<8x8xf32>
    %78 = tpu.matmul %77, %64, %cst_46 {dimension_numbers = #tpu.dot_dimension_numbers<[1], [0], [0], [1], [0, 0, 1, 1], [], []>} : vector<8x8xbf16>, vector<8x8xbf16>, vector<8x8xf32> -> vector<8x8xf32>
    %c8_47 = arith.constant 8 : index
    %c0_48 = arith.constant 0 : index
    %79 = vector.load %arg15[%c8_47, %c0_48] : memref<16x32xf32, #tpu.memory_space<vmem>>, vector<8x32xf32>
    %80 = arith.truncf %78 : vector<8x8xf32> to vector<8x8xbf16>
    %cst_49 = arith.constant dense<0.000000e+00> : vector<8x32xf32>
    %81 = tpu.matmul %80, %39, %cst_49 {dimension_numbers = #tpu.dot_dimension_numbers<[1], [0], [0], [1], [0, 0, 1, 1], [], []>} : vector<8x8xbf16>, vector<8x32xbf16>, vector<8x32xf32> -> vector<8x32xf32>
    %82 = arith.addf %79, %81 : vector<8x32xf32>
    %c8_50 = arith.constant 8 : index
    %c0_51 = arith.constant 0 : index
    %83 = vector.load %arg15[%c8_50, %c0_51] : memref<16x32xf32, #tpu.memory_space<vmem>>, vector<8x32xf32>
    tpu.vector_store %arg15[%c8_50, %c0_51], %82 {strides = array<i32>} : memref<16x32xf32, #tpu.memory_space<vmem>>, vector<8x32xf32>,
    %c0_52 = arith.constant 0 : index
    %c8_53 = arith.constant 8 : index
    %c0_54 = arith.constant 0 : index
    %84 = vector.load %arg6[%c0_52, %c8_53, %c0_54] : memref<1x32x32xbf16, #tpu.memory_space<vmem>>, vector<1x8x32xbf16>
    %85 = vector.shape_cast %84 : vector<1x8x32xbf16> to vector<8x32xbf16>
    %c0_55 = arith.constant 0 : index
    %c8_56 = arith.constant 8 : index
    %86 = vector.load %arg14[%c0_55, %c8_56] : memref<16x96xbf16, #tpu.memory_space<vmem>>, vector<8x8xbf16>
    %c0_57 = arith.constant 0 : index
    %c40 = arith.constant 40 : index
    %87 = vector.load %arg14[%c0_57, %c40] : memref<16x96xbf16, #tpu.memory_space<vmem>>, vector<8x8xbf16>
    %c0_58 = arith.constant 0 : index
    %c72 = arith.constant 72 : index
    %88 = vector.load %arg14[%c0_58, %c72] : memref<16x96xbf16, #tpu.memory_space<vmem>>, vector<8x8xbf16>
    %cst_59 = arith.constant dense<0.000000e+00> : vector<8x8xf32>
    %89 = tpu.matmul %86, %87, %cst_59 {dimension_numbers = #tpu.dot_dimension_numbers<[1], [1], [0], [0], [0, 0, 1, 0], [], []>} : vector<8x8xbf16>, vector<8x8xbf16>, vector<8x8xf32> -> vector<8x8xf32>
    %90 = arith.addf %89, %32 : vector<8x8xf32>
    %cst_60 = arith.constant dense<0xFF800000> : vector<8xf32>
    %91 = vector.multi_reduction <maximumf>, %90, %cst_60 [1] : vector<8x8xf32> to vector<8xf32>
    %92 = vector.shape_cast %91 : vector<8xf32> to vector<8x1xf32>
    %93 = vector.broadcast %92 : vector<8x1xf32> to vector<8x8xf32>
    %94 = arith.subf %90, %93 : vector<8x8xf32>
    %95 = math.exp %94 : vector<8x8xf32>
    %cst_61 = arith.constant dense<0.000000e+00> : vector<8xf32>
    %96 = vector.multi_reduction <add>, %95, %cst_61 [1] : vector<8x8xf32> to vector<8xf32>
    %97 = vector.shape_cast %96 : vector<8xf32> to vector<8x1xf32>
    %98 = tpu.reciprocal %97 {approx = true} : vector<8x1xf32> -> vector<8x1xf32>
    %99 = vector.broadcast %98 : vector<8x1xf32> to vector<8x8xf32>
    %100 = arith.mulf %95, %99 : vector<8x8xf32>
    %101 = arith.truncf %100 : vector<8x8xf32> to vector<8x8xbf16>
    %cst_62 = arith.constant dense<0.000000e+00> : vector<8x8xf32>
    %102 = tpu.matmul %101, %88, %cst_62 {dimension_numbers = #tpu.dot_dimension_numbers<[1], [0], [0], [1], [0, 0, 1, 1], [], []>} : vector<8x8xbf16>, vector<8x8xbf16>, vector<8x8xf32> -> vector<8x8xf32>
    %c0_63 = arith.constant 0 : index
    %c0_64 = arith.constant 0 : index
    %103 = vector.load %arg15[%c0_63, %c0_64] : memref<16x32xf32, #tpu.memory_space<vmem>>, vector<8x32xf32>
    %104 = arith.truncf %102 : vector<8x8xf32> to vector<8x8xbf16>
    %cst_65 = arith.constant dense<0.000000e+00> : vector<8x32xf32>
    %105 = tpu.matmul %104, %85, %cst_65 {dimension_numbers = #tpu.dot_dimension_numbers<[1], [0], [0], [1], [0, 0, 1, 1], [], []>} : vector<8x8xbf16>, vector<8x32xbf16>, vector<8x32xf32> -> vector<8x32xf32>
    %106 = arith.addf %103, %105 : vector<8x32xf32>
    %c0_66 = arith.constant 0 : index
    %c0_67 = arith.constant 0 : index
    %107 = vector.load %arg15[%c0_66, %c0_67] : memref<16x32xf32, #tpu.memory_space<vmem>>, vector<8x32xf32>
    tpu.vector_store %arg15[%c0_66, %c0_67], %106 {strides = array<i32>} : memref<16x32xf32, #tpu.memory_space<vmem>>, vector<8x32xf32>,
    %c8_68 = arith.constant 8 : index
    %c8_69 = arith.constant 8 : index
    %108 = vector.load %arg14[%c8_68, %c8_69] : memref<16x96xbf16, #tpu.memory_space<vmem>>, vector<8x8xbf16>
    %c8_70 = arith.constant 8 : index
    %c40_71 = arith.constant 40 : index
    %109 = vector.load %arg14[%c8_70, %c40_71] : memref<16x96xbf16, #tpu.memory_space<vmem>>, vector<8x8xbf16>
    %c8_72 = arith.constant 8 : index
    %c72_73 = arith.constant 72 : index
    %110 = vector.load %arg14[%c8_72, %c72_73] : memref<16x96xbf16, #tpu.memory_space<vmem>>, vector<8x8xbf16>
    %cst_74 = arith.constant dense<0.000000e+00> : vector<8x8xf32>
    %111 = tpu.matmul %108, %109, %cst_74 {dimension_numbers = #tpu.dot_dimension_numbers<[1], [1], [0], [0], [0, 0, 1, 0], [], []>} : vector<8x8xbf16>, vector<8x8xbf16>, vector<8x8xf32> -> vector<8x8xf32>
    %112 = arith.addf %111, %32 : vector<8x8xf32>
    %cst_75 = arith.constant dense<0xFF800000> : vector<8xf32>
    %113 = vector.multi_reduction <maximumf>, %112, %cst_75 [1] : vector<8x8xf32> to vector<8xf32>
    %114 = vector.shape_cast %113 : vector<8xf32> to vector<8x1xf32>
    %115 = vector.broadcast %114 : vector<8x1xf32> to vector<8x8xf32>
    %116 = arith.subf %112, %115 : vector<8x8xf32>
    %117 = math.exp %116 : vector<8x8xf32>
    %cst_76 = arith.constant dense<0.000000e+00> : vector<8xf32>
    %118 = vector.multi_reduction <add>, %117, %cst_76 [1] : vector<8x8xf32> to vector<8xf32>
    %119 = vector.shape_cast %118 : vector<8xf32> to vector<8x1xf32>
    %120 = tpu.reciprocal %119 {approx = true} : vector<8x1xf32> -> vector<8x1xf32>
    %121 = vector.broadcast %120 : vector<8x1xf32> to vector<8x8xf32>
    %122 = arith.mulf %117, %121 : vector<8x8xf32>
    %123 = arith.truncf %122 : vector<8x8xf32> to vector<8x8xbf16>
    %cst_77 = arith.constant dense<0.000000e+00> : vector<8x8xf32>
    %124 = tpu.matmul %123, %110, %cst_77 {dimension_numbers = #tpu.dot_dimension_numbers<[1], [0], [0], [1], [0, 0, 1, 1], [], []>} : vector<8x8xbf16>, vector<8x8xbf16>, vector<8x8xf32> -> vector<8x8xf32>
    %c8_78 = arith.constant 8 : index
    %c0_79 = arith.constant 0 : index
    %125 = vector.load %arg15[%c8_78, %c0_79] : memref<16x32xf32, #tpu.memory_space<vmem>>, vector<8x32xf32>
    %126 = arith.truncf %124 : vector<8x8xf32> to vector<8x8xbf16>
    %cst_80 = arith.constant dense<0.000000e+00> : vector<8x32xf32>
    %127 = tpu.matmul %126, %85, %cst_80 {dimension_numbers = #tpu.dot_dimension_numbers<[1], [0], [0], [1], [0, 0, 1, 1], [], []>} : vector<8x8xbf16>, vector<8x32xbf16>, vector<8x32xf32> -> vector<8x32xf32>
    %128 = arith.addf %125, %127 : vector<8x32xf32>
    %c8_81 = arith.constant 8 : index
    %c0_82 = arith.constant 0 : index
    %129 = vector.load %arg15[%c8_81, %c0_82] : memref<16x32xf32, #tpu.memory_space<vmem>>, vector<8x32xf32>
    tpu.vector_store %arg15[%c8_81, %c0_82], %128 {strides = array<i32>} : memref<16x32xf32, #tpu.memory_space<vmem>>, vector<8x32xf32>,
    %c0_83 = arith.constant 0 : index
    %c16 = arith.constant 16 : index
    %c0_84 = arith.constant 0 : index
    %130 = vector.load %arg6[%c0_83, %c16, %c0_84] : memref<1x32x32xbf16, #tpu.memory_space<vmem>>, vector<1x8x32xbf16>
    %131 = vector.shape_cast %130 : vector<1x8x32xbf16> to vector<8x32xbf16>
    %c0_85 = arith.constant 0 : index
    %c16_86 = arith.constant 16 : index
    %132 = vector.load %arg14[%c0_85, %c16_86] : memref<16x96xbf16, #tpu.memory_space<vmem>>, vector<8x8xbf16>
    %c0_87 = arith.constant 0 : index
    %c48 = arith.constant 48 : index
    %133 = vector.load %arg14[%c0_87, %c48] : memref<16x96xbf16, #tpu.memory_space<vmem>>, vector<8x8xbf16>
    %c0_88 = arith.constant 0 : index
    %c80 = arith.constant 80 : index
    %134 = vector.load %arg14[%c0_88, %c80] : memref<16x96xbf16, #tpu.memory_space<vmem>>, vector<8x8xbf16>
    %cst_89 = arith.constant dense<0.000000e+00> : vector<8x8xf32>
    %135 = tpu.matmul %132, %133, %cst_89 {dimension_numbers = #tpu.dot_dimension_numbers<[1], [1], [0], [0], [0, 0, 1, 0], [], []>} : vector<8x8xbf16>, vector<8x8xbf16>, vector<8x8xf32> -> vector<8x8xf32>
    %136 = arith.addf %135, %32 : vector<8x8xf32>
    %cst_90 = arith.constant dense<0xFF800000> : vector<8xf32>
    %137 = vector.multi_reduction <maximumf>, %136, %cst_90 [1] : vector<8x8xf32> to vector<8xf32>
    %138 = vector.shape_cast %137 : vector<8xf32> to vector<8x1xf32>
    %139 = vector.broadcast %138 : vector<8x1xf32> to vector<8x8xf32>
    %140 = arith.subf %136, %139 : vector<8x8xf32>
    %141 = math.exp %140 : vector<8x8xf32>
    %cst_91 = arith.constant dense<0.000000e+00> : vector<8xf32>
    %142 = vector.multi_reduction <add>, %141, %cst_91 [1] : vector<8x8xf32> to vector<8xf32>
    %143 = vector.shape_cast %142 : vector<8xf32> to vector<8x1xf32>
    %144 = tpu.reciprocal %143 {approx = true} : vector<8x1xf32> -> vector<8x1xf32>
    %145 = vector.broadcast %144 : vector<8x1xf32> to vector<8x8xf32>
    %146 = arith.mulf %141, %145 : vector<8x8xf32>
    %147 = arith.truncf %146 : vector<8x8xf32> to vector<8x8xbf16>
    %cst_92 = arith.constant dense<0.000000e+00> : vector<8x8xf32>
    %148 = tpu.matmul %147, %134, %cst_92 {dimension_numbers = #tpu.dot_dimension_numbers<[1], [0], [0], [1], [0, 0, 1, 1], [], []>} : vector<8x8xbf16>, vector<8x8xbf16>, vector<8x8xf32> -> vector<8x8xf32>
    %c0_93 = arith.constant 0 : index
    %c0_94 = arith.constant 0 : index
    %149 = vector.load %arg15[%c0_93, %c0_94] : memref<16x32xf32, #tpu.memory_space<vmem>>, vector<8x32xf32>
    %150 = arith.truncf %148 : vector<8x8xf32> to vector<8x8xbf16>
    %cst_95 = arith.constant dense<0.000000e+00> : vector<8x32xf32>
    %151 = tpu.matmul %150, %131, %cst_95 {dimension_numbers = #tpu.dot_dimension_numbers<[1], [0], [0], [1], [0, 0, 1, 1], [], []>} : vector<8x8xbf16>, vector<8x32xbf16>, vector<8x32xf32> -> vector<8x32xf32>
    %152 = arith.addf %149, %151 : vector<8x32xf32>
    %c0_96 = arith.constant 0 : index
    %c0_97 = arith.constant 0 : index
    %153 = vector.load %arg15[%c0_96, %c0_97] : memref<16x32xf32, #tpu.memory_space<vmem>>, vector<8x32xf32>
    tpu.vector_store %arg15[%c0_96, %c0_97], %152 {strides = array<i32>} : memref<16x32xf32, #tpu.memory_space<vmem>>, vector<8x32xf32>,
    %c8_98 = arith.constant 8 : index
    %c16_99 = arith.constant 16 : index
    %154 = vector.load %arg14[%c8_98, %c16_99] : memref<16x96xbf16, #tpu.memory_space<vmem>>, vector<8x8xbf16>
    %c8_100 = arith.constant 8 : index
    %c48_101 = arith.constant 48 : index
    %155 = vector.load %arg14[%c8_100, %c48_101] : memref<16x96xbf16, #tpu.memory_space<vmem>>, vector<8x8xbf16>
    %c8_102 = arith.constant 8 : index
    %c80_103 = arith.constant 80 : index
    %156 = vector.load %arg14[%c8_102, %c80_103] : memref<16x96xbf16, #tpu.memory_space<vmem>>, vector<8x8xbf16>
    %cst_104 = arith.constant dense<0.000000e+00> : vector<8x8xf32>
    %157 = tpu.matmul %154, %155, %cst_104 {dimension_numbers = #tpu.dot_dimension_numbers<[1], [1], [0], [0], [0, 0, 1, 0], [], []>} : vector<8x8xbf16>, vector<8x8xbf16>, vector<8x8xf32> -> vector<8x8xf32>
    %158 = arith.addf %157, %32 : vector<8x8xf32>
    %cst_105 = arith.constant dense<0xFF800000> : vector<8xf32>
    %159 = vector.multi_reduction <maximumf>, %158, %cst_105 [1] : vector<8x8xf32> to vector<8xf32>
    %160 = vector.shape_cast %159 : vector<8xf32> to vector<8x1xf32>
    %161 = vector.broadcast %160 : vector<8x1xf32> to vector<8x8xf32>
    %162 = arith.subf %158, %161 : vector<8x8xf32>
    %163 = math.exp %162 : vector<8x8xf32>
    %cst_106 = arith.constant dense<0.000000e+00> : vector<8xf32>
    %164 = vector.multi_reduction <add>, %163, %cst_106 [1] : vector<8x8xf32> to vector<8xf32>
    %165 = vector.shape_cast %164 : vector<8xf32> to vector<8x1xf32>
    %166 = tpu.reciprocal %165 {approx = true} : vector<8x1xf32> -> vector<8x1xf32>
    %167 = vector.broadcast %166 : vector<8x1xf32> to vector<8x8xf32>
    %168 = arith.mulf %163, %167 : vector<8x8xf32>
    %169 = arith.truncf %168 : vector<8x8xf32> to vector<8x8xbf16>
    %cst_107 = arith.constant dense<0.000000e+00> : vector<8x8xf32>
    %170 = tpu.matmul %169, %156, %cst_107 {dimension_numbers = #tpu.dot_dimension_numbers<[1], [0], [0], [1], [0, 0, 1, 1], [], []>} : vector<8x8xbf16>, vector<8x8xbf16>, vector<8x8xf32> -> vector<8x8xf32>
    %c8_108 = arith.constant 8 : index
    %c0_109 = arith.constant 0 : index
    %171 = vector.load %arg15[%c8_108, %c0_109] : memref<16x32xf32, #tpu.memory_space<vmem>>, vector<8x32xf32>
    %172 = arith.truncf %170 : vector<8x8xf32> to vector<8x8xbf16>
    %cst_110 = arith.constant dense<0.000000e+00> : vector<8x32xf32>
    %173 = tpu.matmul %172, %131, %cst_110 {dimension_numbers = #tpu.dot_dimension_numbers<[1], [0], [0], [1], [0, 0, 1, 1], [], []>} : vector<8x8xbf16>, vector<8x32xbf16>, vector<8x32xf32> -> vector<8x32xf32>
    %174 = arith.addf %171, %173 : vector<8x32xf32>
    %c8_111 = arith.constant 8 : index
    %c0_112 = arith.constant 0 : index
    %175 = vector.load %arg15[%c8_111, %c0_112] : memref<16x32xf32, #tpu.memory_space<vmem>>, vector<8x32xf32>
    tpu.vector_store %arg15[%c8_111, %c0_112], %174 {strides = array<i32>} : memref<16x32xf32, #tpu.memory_space<vmem>>, vector<8x32xf32>,
    %c0_113 = arith.constant 0 : index
    %c24 = arith.constant 24 : index
    %c0_114 = arith.constant 0 : index
    %176 = vector.load %arg6[%c0_113, %c24, %c0_114] : memref<1x32x32xbf16, #tpu.memory_space<vmem>>, vector<1x8x32xbf16>
    %177 = vector.shape_cast %176 : vector<1x8x32xbf16> to vector<8x32xbf16>
    %c0_115 = arith.constant 0 : index
    %c24_116 = arith.constant 24 : index
    %178 = vector.load %arg14[%c0_115, %c24_116] : memref<16x96xbf16, #tpu.memory_space<vmem>>, vector<8x8xbf16>
    %c0_117 = arith.constant 0 : index
    %c56 = arith.constant 56 : index
    %179 = vector.load %arg14[%c0_117, %c56] : memref<16x96xbf16, #tpu.memory_space<vmem>>, vector<8x8xbf16>
    %c0_118 = arith.constant 0 : index
    %c88 = arith.constant 88 : index
    %180 = vector.load %arg14[%c0_118, %c88] : memref<16x96xbf16, #tpu.memory_space<vmem>>, vector<8x8xbf16>
    %cst_119 = arith.constant dense<0.000000e+00> : vector<8x8xf32>
    %181 = tpu.matmul %178, %179, %cst_119 {dimension_numbers = #tpu.dot_dimension_numbers<[1], [1], [0], [0], [0, 0, 1, 0], [], []>} : vector<8x8xbf16>, vector<8x8xbf16>, vector<8x8xf32> -> vector<8x8xf32>
    %182 = arith.addf %181, %32 : vector<8x8xf32>
    %cst_120 = arith.constant dense<0xFF800000> : vector<8xf32>
    %183 = vector.multi_reduction <maximumf>, %182, %cst_120 [1] : vector<8x8xf32> to vector<8xf32>
    %184 = vector.shape_cast %183 : vector<8xf32> to vector<8x1xf32>
    %185 = vector.broadcast %184 : vector<8x1xf32> to vector<8x8xf32>
    %186 = arith.subf %182, %185 : vector<8x8xf32>
    %187 = math.exp %186 : vector<8x8xf32>
    %cst_121 = arith.constant dense<0.000000e+00> : vector<8xf32>
    %188 = vector.multi_reduction <add>, %187, %cst_121 [1] : vector<8x8xf32> to vector<8xf32>
    %189 = vector.shape_cast %188 : vector<8xf32> to vector<8x1xf32>
    %190 = tpu.reciprocal %189 {approx = true} : vector<8x1xf32> -> vector<8x1xf32>
    %191 = vector.broadcast %190 : vector<8x1xf32> to vector<8x8xf32>
    %192 = arith.mulf %187, %191 : vector<8x8xf32>
    %193 = arith.truncf %192 : vector<8x8xf32> to vector<8x8xbf16>
    %cst_122 = arith.constant dense<0.000000e+00> : vector<8x8xf32>
    %194 = tpu.matmul %193, %180, %cst_122 {dimension_numbers = #tpu.dot_dimension_numbers<[1], [0], [0], [1], [0, 0, 1, 1], [], []>} : vector<8x8xbf16>, vector<8x8xbf16>, vector<8x8xf32> -> vector<8x8xf32>
    %c0_123 = arith.constant 0 : index
    %c0_124 = arith.constant 0 : index
    %195 = vector.load %arg15[%c0_123, %c0_124] : memref<16x32xf32, #tpu.memory_space<vmem>>, vector<8x32xf32>
    %196 = arith.truncf %194 : vector<8x8xf32> to vector<8x8xbf16>
    %cst_125 = arith.constant dense<0.000000e+00> : vector<8x32xf32>
    %197 = tpu.matmul %196, %177, %cst_125 {dimension_numbers = #tpu.dot_dimension_numbers<[1], [0], [0], [1], [0, 0, 1, 1], [], []>} : vector<8x8xbf16>, vector<8x32xbf16>, vector<8x32xf32> -> vector<8x32xf32>
    %198 = arith.addf %195, %197 : vector<8x32xf32>
    %c0_126 = arith.constant 0 : index
    %c0_127 = arith.constant 0 : index
    %199 = vector.load %arg15[%c0_126, %c0_127] : memref<16x32xf32, #tpu.memory_space<vmem>>, vector<8x32xf32>
    tpu.vector_store %arg15[%c0_126, %c0_127], %198 {strides = array<i32>} : memref<16x32xf32, #tpu.memory_space<vmem>>, vector<8x32xf32>,
    %c8_128 = arith.constant 8 : index
    %c24_129 = arith.constant 24 : index
    %200 = vector.load %arg14[%c8_128, %c24_129] : memref<16x96xbf16, #tpu.memory_space<vmem>>, vector<8x8xbf16>
    %c8_130 = arith.constant 8 : index
    %c56_131 = arith.constant 56 : index
    %201 = vector.load %arg14[%c8_130, %c56_131] : memref<16x96xbf16, #tpu.memory_space<vmem>>, vector<8x8xbf16>
    %c8_132 = arith.constant 8 : index
    %c88_133 = arith.constant 88 : index
    %202 = vector.load %arg14[%c8_132, %c88_133] : memref<16x96xbf16, #tpu.memory_space<vmem>>, vector<8x8xbf16>
    %cst_134 = arith.constant dense<0.000000e+00> : vector<8x8xf32>
    %203 = tpu.matmul %200, %201, %cst_134 {dimension_numbers = #tpu.dot_dimension_numbers<[1], [1], [0], [0], [0, 0, 1, 0], [], []>} : vector<8x8xbf16>, vector<8x8xbf16>, vector<8x8xf32> -> vector<8x8xf32>
    %204 = arith.addf %203, %32 : vector<8x8xf32>
    %cst_135 = arith.constant dense<0xFF800000> : vector<8xf32>
    %205 = vector.multi_reduction <maximumf>, %204, %cst_135 [1] : vector<8x8xf32> to vector<8xf32>
    %206 = vector.shape_cast %205 : vector<8xf32> to vector<8x1xf32>
    %207 = vector.broadcast %206 : vector<8x1xf32> to vector<8x8xf32>
    %208 = arith.subf %204, %207 : vector<8x8xf32>
    %209 = math.exp %208 : vector<8x8xf32>
    %cst_136 = arith.constant dense<0.000000e+00> : vector<8xf32>
    %210 = vector.multi_reduction <add>, %209, %cst_136 [1] : vector<8x8xf32> to vector<8xf32>
    %211 = vector.shape_cast %210 : vector<8xf32> to vector<8x1xf32>
    %212 = tpu.reciprocal %211 {approx = true} : vector<8x1xf32> -> vector<8x1xf32>
    %213 = vector.broadcast %212 : vector<8x1xf32> to vector<8x8xf32>
    %214 = arith.mulf %209, %213 : vector<8x8xf32>
    %215 = arith.truncf %214 : vector<8x8xf32> to vector<8x8xbf16>
    %cst_137 = arith.constant dense<0.000000e+00> : vector<8x8xf32>
    %216 = tpu.matmul %215, %202, %cst_137 {dimension_numbers = #tpu.dot_dimension_numbers<[1], [0], [0], [1], [0, 0, 1, 1], [], []>} : vector<8x8xbf16>, vector<8x8xbf16>, vector<8x8xf32> -> vector<8x8xf32>
    %c8_138 = arith.constant 8 : index
    %c0_139 = arith.constant 0 : index
    %217 = vector.load %arg15[%c8_138, %c0_139] : memref<16x32xf32, #tpu.memory_space<vmem>>, vector<8x32xf32>
    %218 = arith.truncf %216 : vector<8x8xf32> to vector<8x8xbf16>
    %cst_140 = arith.constant dense<0.000000e+00> : vector<8x32xf32>
    %219 = tpu.matmul %218, %177, %cst_140 {dimension_numbers = #tpu.dot_dimension_numbers<[1], [0], [0], [1], [0, 0, 1, 1], [], []>} : vector<8x8xbf16>, vector<8x32xbf16>, vector<8x32xf32> -> vector<8x32xf32>
    %220 = arith.addf %217, %219 : vector<8x32xf32>
    %c8_141 = arith.constant 8 : index
    %c0_142 = arith.constant 0 : index
    %221 = vector.load %arg15[%c8_141, %c0_142] : memref<16x32xf32, #tpu.memory_space<vmem>>, vector<8x32xf32>
    tpu.vector_store %arg15[%c8_141, %c0_142], %220 {strides = array<i32>} : memref<16x32xf32, #tpu.memory_space<vmem>>, vector<8x32xf32>,
    %c0_143 = arith.constant 0 : index
    %c0_144 = arith.constant 0 : index
    %222 = vector.load %arg15[%c0_143, %c0_144] : memref<16x32xf32, #tpu.memory_space<vmem>>, vector<16x32xf32>
    %cst_145 = arith.constant dense<0.000000e+00> : vector<16xf32>
    %223 = vector.multi_reduction <add>, %222, %cst_145 [1] : vector<16x32xf32> to vector<16xf32>
    %224 = vector.shape_cast %223 : vector<16xf32> to vector<16x1xf32>
    %cst_146 = arith.constant 3.200000e+01 : f32
    %225 = vector.broadcast %cst_146 : f32 to vector<16x1xf32>
    %226 = arith.divf %224, %225 : vector<16x1xf32>
    %227 = vector.broadcast %226 : vector<16x1xf32> to vector<16x32xf32>
    %228 = arith.subf %222, %227 : vector<16x32xf32>
    %229 = arith.mulf %228, %228 : vector<16x32xf32>
    %cst_147 = arith.constant dense<0.000000e+00> : vector<16xf32>
    %230 = vector.multi_reduction <add>, %229, %cst_147 [1] : vector<16x32xf32> to vector<16xf32>
    %231 = vector.shape_cast %230 : vector<16xf32> to vector<16x1xf32>
    %cst_148 = arith.constant 3.200000e+01 : f32
    %232 = vector.broadcast %cst_148 : f32 to vector<16x1xf32>
    %233 = arith.divf %231, %232 : vector<16x1xf32>
    %234 = vector.broadcast %226 : vector<16x1xf32> to vector<16x32xf32>
    %235 = arith.subf %222, %234 : vector<16x32xf32>
    %cst_149 = arith.constant 9.99999974E-6 : f32
    %236 = vector.broadcast %cst_149 : f32 to vector<16x1xf32>
    %237 = arith.addf %233, %236 : vector<16x1xf32>
    %238 = math.rsqrt %237 : vector<16x1xf32>
    %239 = vector.broadcast %238 : vector<16x1xf32> to vector<16x32xf32>
    %240 = arith.mulf %235, %239 : vector<16x32xf32>
    %241 = arith.truncf %240 : vector<16x32xf32> to vector<16x32xbf16>
    %c0_150 = arith.constant 0 : index
    %c0_151 = arith.constant 0 : index
    %c0_152 = arith.constant 0 : index
    %242 = vector.load %arg8[%c0_150, %c0_151, %c0_152] : memref<1x32x128xbf16, #tpu.memory_space<vmem>>, vector<1x32x128xbf16>
    %243 = vector.shape_cast %242 : vector<1x32x128xbf16> to vector<32x128xbf16>
    %cst_153 = arith.constant dense<0.000000e+00> : vector<16x128xf32>
    %244 = tpu.matmul %241, %243, %cst_153 {dimension_numbers = #tpu.dot_dimension_numbers<[1], [0], [0], [1], [0, 0, 1, 1], [], []>} : vector<16x32xbf16>, vector<32x128xbf16>, vector<16x128xf32> -> vector<16x128xf32>
    %c0_154 = arith.constant 0 : index
    %c0_155 = arith.constant 0 : index
    %c0_156 = arith.constant 0 : index
    %245 = vector.load %arg9[%c0_154, %c0_155, %c0_156] : memref<1x1x128xf32, #tpu.memory_space<vmem>>, vector<1x1x128xf32>
    %246 = vector.shape_cast %245 : vector<1x1x128xf32> to vector<1x128xf32>
    %247 = vector.broadcast %246 : vector<1x128xf32> to vector<16x128xf32>
    %248 = arith.addf %244, %247 : vector<16x128xf32>
    %cst_157 = arith.constant 1.702000e+00 : f32
    %249 = vector.broadcast %cst_157 : f32 to vector<16x128xf32>
    %250 = arith.mulf %249, %248 : vector<16x128xf32>
    %251 = arith.negf %250 : vector<16x128xf32>
    %252 = math.exp %251 : vector<16x128xf32>
    %cst_158 = arith.constant 1.000000e+00 : f32
    %253 = vector.broadcast %cst_158 : f32 to vector<16x128xf32>
    %254 = arith.addf %253, %252 : vector<16x128xf32>
    %255 = arith.divf %253, %254 : vector<16x128xf32>
    %256 = arith.mulf %248, %255 : vector<16x128xf32>
    %257 = arith.truncf %256 : vector<16x128xf32> to vector<16x128xbf16>
    %c0_159 = arith.constant 0 : index
    %c0_160 = arith.constant 0 : index
    %c0_161 = arith.constant 0 : index
    %258 = vector.load %arg10[%c0_159, %c0_160, %c0_161] : memref<1x128x32xbf16, #tpu.memory_space<vmem>>, vector<1x128x32xbf16>
    %259 = vector.shape_cast %258 : vector<1x128x32xbf16> to vector<128x32xbf16>
    %cst_162 = arith.constant dense<0.000000e+00> : vector<16x32xf32>
    %260 = tpu.matmul %257, %259, %cst_162 {dimension_numbers = #tpu.dot_dimension_numbers<[1], [0], [0], [1], [0, 0, 1, 1], [], []>} : vector<16x128xbf16>, vector<128x32xbf16>, vector<16x32xf32> -> vector<16x32xf32>
    %c0_163 = arith.constant 0 : index
    %c0_164 = arith.constant 0 : index
    %c0_165 = arith.constant 0 : index
    %261 = vector.load %arg11[%c0_163, %c0_164, %c0_165] : memref<1x1x32xf32, #tpu.memory_space<vmem>>, vector<1x1x32xf32>
    %262 = vector.shape_cast %261 : vector<1x1x32xf32> to vector<1x32xf32>
    %263 = vector.broadcast %262 : vector<1x32xf32> to vector<16x32xf32>
    %264 = arith.addf %260, %263 : vector<16x32xf32>
    %265 = arith.addf %222, %264 : vector<16x32xf32>
    %c0_166 = arith.constant 0 : index
    %c0_167 = arith.constant 0 : index
    %266 = vector.load %arg13[%c0_166, %c0_167] : memref<16x32xf32, #tpu.memory_space<vmem>>, vector<16x32xf32>
    tpu.vector_store %arg13[%c0_166, %c0_167], %265 {strides = array<i32>} : memref<16x32xf32, #tpu.memory_space<vmem>>, vector<16x32xf32>,
    %c1_i32 = arith.constant 1 : i32
    %267 = arith.cmpi eq, %arg1, %c1_i32 : i32
    %268 = arith.extui %267 : i1 to i32
    %c0_i32_168 = arith.constant 0 : i32
    %269 = arith.cmpi ne, %268, %c0_i32_168 : i32
    scf.if %269 {
      %c0_169 = arith.constant 0 : index
      %c0_170 = arith.constant 0 : index
      %c0_171 = arith.constant 0 : index
      %270 = vector.load %arg12[%c0_169, %c0_170, %c0_171] : memref<1x16x32xf32, #tpu.memory_space<vmem>>, vector<1x16x32xf32>
      %271 = vector.shape_cast %270 : vector<1x16x32xf32> to vector<16x32xf32>
      %272 = vector.shape_cast %265 : vector<16x32xf32> to vector<1x16x32xf32>
      tpu.vector_store %arg12[%c0_169, %c0_170, %c0_171], %272 {strides = array<i32>} : memref<1x16x32xf32, #tpu.memory_space<vmem>>, vector<1x16x32xf32>,
    } else {
    }
    return
  }
  func.func @transform_0(%arg0: i32, %arg1: i32) -> (i32, i32, i32) {
    %c0_i32 = arith.constant 0 : i32
    %c0_i32_0 = arith.constant 0 : i32
    %c0_i32_1 = arith.constant 0 : i32
    return %arg0, %c0_i32, %c0_i32_0 : i32, i32, i32
  }
  func.func @transform_1(%arg0: i32, %arg1: i32) -> (i32, i32) {
    %c0_i32 = arith.constant 0 : i32
    %c0_i32_0 = arith.constant 0 : i32
    %c0_i32_1 = arith.constant 0 : i32
    return %c0_i32, %c0_i32_0 : i32, i32
  }
  func.func @transform_2(%arg0: i32, %arg1: i32) -> (i32, i32, i32) {
    %c0_i32 = arith.constant 0 : i32
    %c0_i32_0 = arith.constant 0 : i32
    %c0_i32_1 = arith.constant 0 : i32
    return %arg1, %c0_i32, %c0_i32_0 : i32, i32, i32
  }
  func.func @transform_3(%arg0: i32, %arg1: i32) -> (i32, i32, i32) {
    %c0_i32 = arith.constant 0 : i32
    %c0_i32_0 = arith.constant 0 : i32
    %c0_i32_1 = arith.constant 0 : i32
    return %arg1, %c0_i32, %c0_i32_0 : i32, i32, i32
  }
  func.func @transform_4(%arg0: i32, %arg1: i32) -> (i32, i32, i32) {
    %c0_i32 = arith.constant 0 : i32
    %c0_i32_0 = arith.constant 0 : i32
    %c0_i32_1 = arith.constant 0 : i32
    return %arg1, %c0_i32, %c0_i32_0 : i32, i32, i32
  }
  func.func @transform_5(%arg0: i32, %arg1: i32) -> (i32, i32, i32) {
    %c0_i32 = arith.constant 0 : i32
    %c0_i32_0 = arith.constant 0 : i32
    %c0_i32_1 = arith.constant 0 : i32
    return %arg1, %c0_i32, %c0_i32_0 : i32, i32, i32
  }
  func.func @transform_6(%arg0: i32, %arg1: i32) -> (i32, i32, i32) {
    %c0_i32 = arith.constant 0 : i32
    %c0_i32_0 = arith.constant 0 : i32
    %c0_i32_1 = arith.constant 0 : i32
    return %arg1, %c0_i32, %c0_i32_0 : i32, i32, i32
  }
  func.func @transform_7(%arg0: i32, %arg1: i32) -> (i32, i32, i32) {
    %c0_i32 = arith.constant 0 : i32
    %c0_i32_0 = arith.constant 0 : i32
    %c0_i32_1 = arith.constant 0 : i32
    return %arg1, %c0_i32, %c0_i32_0 : i32, i32, i32
  }
  func.func @transform_8(%arg0: i32, %arg1: i32) -> (i32, i32, i32) {
    %c0_i32 = arith.constant 0 : i32
    %c0_i32_0 = arith.constant 0 : i32
    %c0_i32_1 = arith.constant 0 : i32
    return %arg1, %c0_i32, %c0_i32_0 : i32, i32, i32
  }
  func.func @transform_9(%arg0: i32, %arg1: i32) -> (i32, i32, i32) {
    %c0_i32 = arith.constant 0 : i32
    %c0_i32_0 = arith.constant 0 : i32
    %c0_i32_1 = arith.constant 0 : i32
    return %arg1, %c0_i32, %c0_i32_0 : i32, i32, i32
  }
  func.func @transform_10(%arg0: i32, %arg1: i32) -> (i32, i32, i32) {
    %c0_i32 = arith.constant 0 : i32
    %c0_i32_0 = arith.constant 0 : i32
    %c0_i32_1 = arith.constant 0 : i32
    return %arg0, %c0_i32, %c0_i32_0 : i32, i32, i32
  }
}

</mosaic_0001>

<bundles_post_ra>
// kernel: tpu_custom_call.1
= control target key start
LH: loop header
LB: loop body
LE: loop exit
PB: predicated region body
PF: predicated region fallthrough
CT: control target
= control target key end

     0   :  { %s3206_s0 = inlined_call_operand.vmem [shape: f32[1,16,32], index: 0, kind: input, shape index: {}]   ;;  %s3207_s1 = inlined_call_operand.vmem [shape: f32[8,8], index: 1, kind: input, shape index: {}]   ;;  %s3208_s2 = inlined_call_operand.vmem [shape: bf16[2,32,96], index: 2, kind: input, shape index: {}]   ;;  %s3209_s3 = inlined_call_operand.vmem [shape: f32[2,1,96], index: 3, kind: input, shape index: {}]   ;;  %s3210_s4 = inlined_call_operand.vmem [shape: bf16[2,32,32], index: 4, kind: input, shape index: {}]   ;;  %s3211_s5 = inlined_call_operand.vmem [shape: f32[2,1,32], index: 5, kind: input, shape index: {}]   ;;  %s3212_s6 = inlined_call_operand.vmem [shape: bf16[2,32,128], index: 6, kind: input, shape index: {}]   ;;  %s3213_s7 = inlined_call_operand.vmem [shape: f32[2,1,128], index: 7, kind: input, shape index: {}]   ;;  %s3214_s8 = inlined_call_operand.vmem [shape: bf16[2,128,32], index: 8, kind: input, shape index: {}]   ;;  %s3215_s9 = inlined_call_operand.vmem [shape: f32[2,1,32], index: 9, kind: input, shape index: {}]   ;;  %s3216_s10 = inlined_call_operand.hbm [shape: f32[1,16,32], index: 10, kind: output, shape index: {}]  }
   0x1   :  { %3217 = sst [smem:[#allocation9_spill]] %s3208_s2 }
   0x2   :  { %3218 = sst [smem:[#allocation10_spill]] %s3210_s4 }
   0x3   :  { %15 = vsyncpa [#allocation6], 0  ;;  %s2837_s13 = smov 0   ;;  %s2839_s14 = smov 0  }
   0x4   :  { %s2841_s15 = smov 0  }
   0x5 LB: > { %s30_s17 = sadd.s32 1, %s2760_s14  ;;  %p2300_p1 = scmp.ge.s32.totalorder %s2764_s15, 1  ;;  %s2764_s15 = sphi %s2841_s15, %s21_s15   ;;  %s2760_s14 = sphi %s2839_s14, %s3227_s14   ;;  %s2756_s13 = sphi %s2837_s13, %s3226_s13  }
   0x6   : > { %p31_p0 = scmp.ge.s32.totalorder %s30_s17, 2  ;;  %p397_p2 = scmp.lt.s32.totalorder %s2764_s15, 3 }
   0x8   : > { %s3229_s17 = smov (%p31_p0, %s30_s17), 0  ;;  %p398_p3 = pnand %p2300_p1, %p397_p2 }
   0x9   : > { %3219 = sst [smem:[#allocation8_spill]] %s3229_s17  ;;  %p467_p4 = scmp.lt.s32.totalorder (!%p398_p3), %s2756_s13, 1 }
   0xa   : > { %401 = sbr.rel (%p398_p3) target bundleno = 5912 (0x1718), region = 60  ;;  %s3220_s2 = sld [smem:[#allocation9_spill]] (!%p398_p3) }
   0xb   : > { %s3221_s4 = sld [smem:[#allocation10_spill]] (!%p398_p3)  ;;  %p2309_p5 = scmp.ne.s32.totalorder (!%p398_p3), %s2756_s13, 0 }
  0x11   : > { %s2860_s18 = scalar_select %p467_p4, %s2756_s13, 1 }
  0x12   : > { %503 = sbr.rel (%p2309_p5) target bundleno = 25 (0x19), region = 64  ;;  %v504_v0 = vld [vmem:[%s3206_s0] sm:$0xff] (!%p2309_p5)  ;;  %vm506_vm0 = vcmask (!%p2309_p5), 261120   ;;  %v505_v1 = vld [vmem:[%s3206_s0 + $0x8] sm:$0xff] (!%p2309_p5) }
  0x13   : > { %s2359_s19 = sshll.u32 %s2860_s18, 4  ;;  %s482_s11 = scalar_lea.vmem %s3211_s5, %s2860_s18  ;;  %507 = vst.msk [vmem:[#allocation2] sm:$0xff] (!%p2309_p5), %vm506_vm0, %v504_v0  ;;  %508 = vst.msk [vmem:[#allocation2 + $0x8] sm:$0xff] (!%p2309_p5), %vm506_vm0, %v505_v1 }
  0x14   : > { %s2870_s25 = scalar_lea.vmem %s3220_s2, %s2359_s19  ;;  %s2875_s28 = scalar_lea.vmem %s3221_s4, %s2359_s19 }
  0x15   : > { %s2884_s17 = scalar_lea.vmem %s3212_s6, %s2359_s19  ;;  %s490_s23 = scalar_lea.vmem %s3213_s7, %s2860_s18 }
  0x16   : > { %s2362_s24 = sshll.u32 %s2860_s18, 6  ;;  %s498_s29 = scalar_lea.vmem %s3215_s9, %s2860_s18 }
  0x17   : > { %s2894_s26 = scalar_lea.vmem %s3214_s8, %s2362_s24 }
  0x19 PF: > { %vm511_vm1 = vcmask 261120   ;;  %v2314_v3 = vld [vmem:[%s482_s11] ss:$0 sm:$0xff]  ;;  %v2766_v20 = vmov 0.0   ;;  %vm2767_vm2 = vmmov 0   ;;  %v2653_v21 = vld [vmem:[%s2870_s25 + $0x8] sm:$0xff]   ;;  %s3222_s22 = scalar_lea.vmem %s3209_s3, %s2860_s18 }
  0x1a   : > { %v509_v2 = vld [vmem:[#allocation2] sm:$0xff]  ;;  %v510_v4 = vld [vmem:[#allocation2 + $0x8] sm:$0xff]  ;;  %2426 = vmatprep.subr.bf16.mxu1 %v2766_v20  ;;  %2430 = vmatprep.mubr.msk.bf16.mxu1 %vm2767_vm2, %v2766_v20  ;;  %vm608_vm3 = vcmask 785408   ;;  %vm627_vm4 = vcmask 64512   ;;  %s2769_s21 = smov 64   ;;  %s2770_s24 = smov 120  }
  0x1b   : > { %v512_v5 = vsel %vm511_vm1, %v509_v2, 0.0  ;;  %v618_v6 = vadd.f32 %v2314_v3, %v509_v2  ;;  %v515_v7 = vsel %vm511_vm1, %v510_v4, 0.0  ;;  %v619_v8 = vadd.f32 %v2314_v3, %v510_v4  ;;  %v2652_v19 = vld [vmem:[%s2870_s25] sm:$0xff]   ;;  %2452 = vmatprep.subr.bf16.mxu0 %v2766_v20  ;;  %2454 = vmatprep.mubr.msk.bf16.mxu0 %vm2767_vm2, %v2766_v20  ;;  %s2768_s25 = smov 96   ;;  %s2771_s27 = smov 88  }
  0x1c   : > { %513 = vadd.xlane.f32.xlu0 %v512_v5  ;;  %2427 = vmatpush3.bf16.msra.mxu1 %v2652_v19  ;;  %v2310_v33 = vld [vmem:[%s3222_s22] ss:$0 sm:$0xff]  ;;  %vm691_vm5 = vcmask 1043456   ;;  %s2772_s16 = smov 56   ;;  %s2773_s19 = smov 80  }
  0x1d   : > { %620 = vst.msk [vmem:[#allocation4] sm:$0xff] %vm511_vm1, %v618_v6  ;;  %621 = vst.msk [vmem:[#allocation4 + $0x8] sm:$0xff] %vm511_vm1, %v619_v8  ;;  %2428 = vmatprep.subr.bf16.mxu1 %v2766_v20  ;;  %v2944_v48 = vld [vmem:[%s3207_s1] sm:$0xff]  ;;  %s2774_s30 = smov 112   ;;  %s2775_s12 = smov 48  }
  0x1e   : > { %v622_v8 = vld [vmem:[%s2875_s28] sm:$0xf]  ;;  %s2776_s2 = smov 72   ;;  %s2777_s4 = smov 104  }
  0x1f   : > { %s2778_s22 = smov 40   ;;  %p2354_p6 = scmp.ne.s32.totalorder %s2756_s13, 1 }
  0x20   : > { %516 = vadd.xlane.f32.xlu0 %v515_v7  ;;  %2429 = vmatpush3.bf16.msra.mxu1 %v2653_v21 }
  0x21   : > { %2434 = vmatprep.subr.bf16.mxu1 %v2766_v20 }
  0xa9   : > { %v514_v9 = vpop.xlane.xlu0 %513 }
  0xaa   : > { %v519_v10 = vmul.f32 0.03125, %v514_v9  ;;  %v741_v9 = vsel %vm691_vm5, %v622_v8, 0 }
  0xac   : > { %v521_v11 = vsub.f32 %v509_v2, %v519_v10 }
  0xad   : > { %v517_v12 = vpop.xlane.xlu0 %516 }
  0xae   : > { %v520_v13 = vmul.f32 0.03125, %v517_v12  ;;  %v523_v14 = vmul.f32 %v521_v11, %v521_v11 }
  0xb0   : > { %v522_v15 = vsub.f32 %v510_v4, %v520_v13  ;;  %v525_v16 = vsel %vm511_vm1, %v523_v14, 0.0 }
  0xb1   : > { %526 = vadd.xlane.f32.xlu1 %v525_v16 }
  0xb2   : > { %v524_v17 = vmul.f32 %v522_v15, %v522_v15 }
  0xb4   : > { %v528_v18 = vsel %vm511_vm1, %v524_v17, 0.0 }
  0xb5   : > { %529 = vadd.xlane.f32.xlu1 %v528_v18 }
 0x13e   : > { %v527_v22 = vpop.xlane.xlu1 %526 }
 0x13f   : > { %v531_v23 = vmul.f32 0.03125, %v527_v22 }
 0x141   : > { %v533_v24 = vadd.f32 1e-05, %v531_v23 }
 0x142   : > { %v530_v25 = vpop.xlane.xlu1 %529 }
 0x143   : > { %v532_v26 = vmul.f32 0.03125, %v530_v25  ;;  %2664 = vrsqrt.f32 %v533_v24 }
 0x145   : > { %v534_v27 = vadd.f32 1e-05, %v532_v26 }
 0x147   : > { %2666 = vrsqrt.f32 %v534_v27 }
 0x14d   : > { %v2665_v28 = vpop.eup %2664 }
 0x14e   : > { %v537_v30 = vmul.f32 %v2665_v28, %v521_v11 }
 0x151   : > { %v2667_v29 = vpop.eup %2666 }
 0x152   : > { %v538_v31 = vmul.f32 %v2667_v29, %v522_v15 }
 0x154   : > { %v539_v32 = vpack.c.bf16 %v538_v31, %v537_v30  ;;  %v735_v31 = vld [vmem:[#allocation4] sm:$0xff] }
 0x156   : > { %2431 = vmatmul.mubr.msk.bf16.vlgmr.msra.gmra.mrb[0].mxu1 %vm511_vm1, %v539_v32 }
 0x157   : > { %2436 = vmatprep.mubr.msk.bf16.mxu1 %vm2767_vm2, %v2766_v20 }
 0x229   : > { %v600_v34 = vpop.f32.mrb[0].mxu1 }
 0x22a   : > { %v2432_v35 = vpop.f32.mrb[1].mxu1  ;;  %v601_v37 = vadd.f32 %v2310_v33, %v600_v34 }
 0x22b   : > { %v603_v36 = vpop.f32.mrb[2].mxu1 }
 0x22c   : > { %v604_v38 = vadd.f32 %v2310_v33, %v603_v36  ;;  %v2433_v39 = vpop.f32.mrb[3].mxu1 }
 0x22e   : > { %v607_v40 = vpack.c.bf16 %v604_v38, %v601_v37 }
 0x230   : > { %609 = vst.msk [vmem:[#allocation3] sm:$0xff] %vm608_vm3, %v607_v40 }
 0x237   : > { %v623_v41 = vld [vmem:[#allocation3] sm:$0xf]  ;;  %v785_v42 = vld [vmem:[#allocation3] sm:$0xf0] }
 0x238   : > { %625 = vrot.lane.b32.xlu0 %v623_v41, %s2768_s25  ;;  %v787_v43 = vrot.slane %v785_v42, 4  ;;  %v2952_v7 = vld [vmem:[#allocation3] sm:$0xf] }
 0x23a   : > { %788 = vrot.lane.b32.xlu1 %v787_v43, %s2768_s25 }
 0x2aa   : > { %v626_v44 = vpop.permute.xlu0 %625 }
 0x2ab   : > { %v632_v45 = vsel %vm627_vm4, %v626_v44, 0 }
 0x2ac   : > { %v789_v46 = vpop.permute.xlu1 %788  ;;  %2435 = vmatpush3.bf16.xpose.msra.mxu1 %v632_v45 }
 0x2ad   : > { %v794_v47 = vsel %vm627_vm4, %v789_v46, 0  ;;  %2440 = vmatprep.subr.bf16.mxu1 %v2766_v20 }
 0x2ae   : > { %2453 = vmatpush3.bf16.xpose.msra.mxu0 %v794_v47 }
 0x2af   : > { %2464 = vmatprep.subr.bf16.mxu0 %v2766_v20 }
 0x2b3   : > { %2437 = vmatmul.mubr.msk.bf16.vlgmr.msra.gmra.mrb[4].mxu1 %vm627_vm4, %v623_v41 }
 0x2b4   : > { %2442 = vmatprep.mubr.msk.bf16.mxu1 %vm2767_vm2, %v2766_v20 }
 0x2b5   : > { %2455 = vmatmul.mubr.msk.bf16.vlgmr.msra.gmra.mrb[0].mxu0 %vm627_vm4, %v787_v43 }
 0x2b6   : > { %2466 = vmatprep.mubr.msk.bf16.mxu0 %vm2767_vm2, %v2766_v20  ;;  %2465 = vmatpush3.bf16.msra.mxu0 %v741_v9 }
 0x2b7   : > { %2476 = vmatprep.subr.bf16.mxu0 %v2766_v20 }
 0x386   : > { %v668_v49 = vpop.f32.mrb[4].mxu1 }
 0x387   : > { %v669_v50 = vadd.f32 %v668_v49, %v2944_v48  ;;  %v2438_v51 = vpop.f32.mrb[5].mxu1  ;;  %v1106_v49 = vld [vmem:[#allocation3] sm:$0xf0] }
 0x388   : > { %v671_v52 = vpop.f32.mrb[6].mxu1  ;;  %v830_v53 = vpop.f32.mrb[0].mxu0 }
 0x389   : > { %v831_v54 = vadd.f32 %v830_v53, %v2944_v48  ;;  %v2439_v55 = vpop.f32.mrb[7].mxu1  ;;  %v2456_v56 = vpop.f32.mrb[1].mxu0  ;;  %v674_v57 = vsel %vm627_vm4, %v669_v50, -inf }
 0x38a   : > { %v833_v58 = vpop.f32.mrb[2].mxu0  ;;  %675 = vmax.xlane.f32.xlu1 %v674_v57 }
 0x38b   : > { %v2457_v59 = vpop.f32.mrb[3].mxu0  ;;  %v836_v60 = vsel %vm627_vm4, %v831_v54, -inf  ;;  %v896_v58 = vld [vmem:[#allocation4 + $0x8] sm:$0xff] }
 0x38e   : > { %837 = vmax.xlane.f32.xlu1 %v836_v60 }
 0x417   : > { %v676_v61 = vpop.xlane.xlu1 %675 }
 0x418   : > { %v677_v62 = vsub.f32 %v669_v50, %v676_v61  ;;  %v2988_v50 = vrot.slane %v1106_v49, 4 }
 0x41a   : > { %v678_v63 = vmul.f32 1.442695, %v677_v62 }
 0x41b   : > { %v838_v0 = vpop.xlane.xlu1 %837 }
 0x41c   : > { %2668 = vpow2.f32 %v678_v63  ;;  %v839_v1 = vsub.f32 %v831_v54, %v838_v0 }
 0x41e   : > { %v840_v2 = vmul.f32 1.442695, %v839_v1 }
 0x420   : > { %2670 = vpow2.f32 %v840_v2 }
 0x426   : > { %v2669_v3 = vpop.eup %2668 }
 0x427   : > { %v680_v4 = vsel %vm627_vm4, %v2669_v3, 0.0 }
 0x428   : > { %681 = vadd.xlane.f32.xlu0 %v680_v4 }
 0x42a   : > { %v2671_v5 = vpop.eup %2670 }
 0x42b   : > { %v842_v6 = vsel %vm627_vm4, %v2671_v5, 0.0 }
 0x42c   : > { %843 = vadd.xlane.f32.xlu1 %v842_v6 }
 0x43d   : > { %848 = vrot.lane.b32.xlu1 %v787_v43, %s2769_s21 }
 0x43e   : > { %686 = vrot.lane.b32.xlu0 %v623_v41, %s2769_s21 }
 0x441   : > { %946 = vrot.lane.b32.xlu1 %v2952_v7, %s2770_s24 }
 0x442   : > { %948 = vrot.lane.b32.xlu0 %v2952_v7, %s2771_s27 }
 0x4b5   : > { %v682_v10 = vpop.xlane.xlu0 %681 }
 0x4b6   : > { %2672 = vrcp.f32 %v682_v10 }
 0x4b9   : > { %v687_v11 = vpop.permute.xlu0 %686  ;;  %v844_v16 = vpop.xlane.xlu1 %843 }
 0x4ba   : > { %v693_v12 = vsel %vm691_vm5, %v687_v11, 0  ;;  %2674 = vrcp.f32 %v844_v16 }
 0x4bb   : > { %2441 = vmatpush3.bf16.msra.mxu1 %v693_v12 }
 0x4bc   : > { %2446 = vmatprep.subr.bf16.mxu1 %v2766_v20 }
 0x4bd   : > { %v849_v17 = vpop.permute.xlu1 %848  ;;  %v949_v27 = vpop.permute.xlu0 %948 }
 0x4be   : > { %v854_v24 = vsel %vm691_vm5, %v849_v17, 0  ;;  %v954_v29 = vsel %vm627_vm4, %v949_v27, 0 }
 0x4c0   : > { %v2673_v13 = vpop.eup %2672 }
 0x4c1   : > { %v684_v14 = vmul.f32 %v2673_v13, %v2669_v3  ;;  %v947_v30 = vpop.permute.xlu1 %946 }
 0x4c3   : > { %v685_v15 = vpack.c.bf16 %v684_v14, %v684_v14 }
 0x4c4   : > { %v2675_v22 = vpop.eup %2674 }
 0x4c5   : > { %2443 = vmatmul.mubr.msk.bf16.vlgmr.msra.gmra.mrb[8].mxu1 %vm627_vm4, %v685_v15  ;;  %v846_v26 = vmul.f32 %v2675_v22, %v2671_v5 }
 0x4c6   : > { %2447 = vmatpush3.bf16.msra.mxu1 %v741_v9  ;;  %2448 = vmatprep.mubr.msk.bf16.mxu1 %vm2767_vm2, %v2766_v20 }
 0x4c7   : > { %2458 = vmatprep.subr.bf16.mxu1 %v2766_v20  ;;  %v847_v28 = vpack.c.bf16 %v846_v26, %v846_v26 }
 0x598   : > { %v729_v18 = vpop.f32.mrb[8].mxu1 }
 0x599   : > { %v736_v19 = vpack.c.bf16 %v729_v18, %v729_v18  ;;  %v2444_v21 = vpop.f32.mrb[9].mxu1 }
 0x59a   : > { %v732_v23 = vpop.f32.mrb[10].mxu1  ;;  %v1267_v21 = vld [vmem:[#allocation3] sm:$0xf] }
 0x59b   : > { %v2445_v25 = vpop.f32.mrb[11].mxu1  ;;  %2449 = vmatmul.mubr.msk.bf16.vlgmr.msra.gmra.mrb[12].mxu1 %vm627_vm4, %v736_v19 }
 0x59c   : > { %2459 = vmatpush3.bf16.msra.mxu1 %v854_v24  ;;  %2460 = vmatprep.mubr.msk.bf16.mxu1 %vm2767_vm2, %v2766_v20 }
 0x59d   : > { %2470 = vmatprep.subr.bf16.mxu1 %v2766_v20 }
 0x5a3   : > { %2461 = vmatmul.mubr.msk.bf16.vlgmr.msra.gmra.mrb[16].mxu1 %vm627_vm4, %v847_v28 }
 0x5a4   : > { %2472 = vmatprep.mubr.msk.bf16.mxu1 %vm2767_vm2, %v2766_v20 }
 0x5a5   : > { %2471 = vmatpush3.bf16.xpose.msra.mxu1 %v954_v29 }
 0x5a6   : > { %2482 = vmatprep.subr.bf16.mxu1 %v2766_v20 }
 0x5ac   : > { %2473 = vmatmul.mubr.msk.bf16.vlgmr.msra.gmra.mrb[20].mxu1 %vm627_vm4, %v947_v30 }
 0x5ad   : > { %2484 = vmatprep.mubr.msk.bf16.mxu1 %vm2767_vm2, %v2766_v20 }
 0x66e   : > { %v777_v32 = vpop.f32.mrb[12].mxu1 }
 0x66f   : > { %v783_v33 = vadd.f32 %v777_v32, %v735_v31  ;;  %v2450_v34 = vpop.f32.mrb[13].mxu1 }
 0x670   : > { %v780_v35 = vpop.f32.mrb[14].mxu1 }
 0x671   : > { %784 = vst.msk [vmem:[#allocation4] sm:$0xff] %vm511_vm1, %v783_v33  ;;  %v2451_v36 = vpop.f32.mrb[15].mxu1 }
 0x676   : > { %v890_v37 = vpop.f32.mrb[16].mxu1 }
 0x677   : > { %v897_v38 = vpack.c.bf16 %v890_v37, %v890_v37  ;;  %v2462_v39 = vpop.f32.mrb[17].mxu1 }
 0x678   : > { %v893_v40 = vpop.f32.mrb[18].mxu1  ;;  %v1056_v27 = vld [vmem:[#allocation4] sm:$0xff] }
 0x679   : > { %v2463_v41 = vpop.f32.mrb[19].mxu1  ;;  %2467 = vmatmul.mubr.msk.bf16.vlgmr.msra.gmra.mrb[4].mxu0 %vm627_vm4, %v897_v38 }
 0x67a   : > { %2478 = vmatprep.mubr.msk.bf16.mxu0 %vm2767_vm2, %v2766_v20 }
 0x67f   : > { %v990_v42 = vpop.f32.mrb[20].mxu1 }
 0x680   : > { %v991_v43 = vadd.f32 %v990_v42, %v2944_v48  ;;  %v2474_v44 = vpop.f32.mrb[21].mxu1 }
 0x681   : > { %v993_v45 = vpop.f32.mrb[22].mxu1 }
 0x682   : > { %v2475_v46 = vpop.f32.mrb[23].mxu1  ;;  %v996_v47 = vsel %vm627_vm4, %v991_v43, -inf }
 0x683   : > { %997 = vmax.xlane.f32.xlu0 %v996_v47 }
 0x699   : > { %1008 = vrot.lane.b32.xlu0 %v2952_v7, %s2772_s16  ;;  %v943_v7 = vld [vmem:[%s2875_s28 + $0x4] sm:$0xf] }
 0x69a   : > { %v1062_v8 = vsel %vm691_vm5, %v943_v7, 0 }
 0x69b   : > { %2483 = vmatpush3.bf16.msra.mxu1 %v1062_v8 }
 0x69c   : > { %2494 = vmatprep.subr.bf16.mxu1 %v2766_v20 }
 0x69d   : > { %1109 = vrot.lane.b32.xlu0 %v2988_v50, %s2770_s24 }
 0x710   : > { %v998_v51 = vpop.xlane.xlu0 %997 }
 0x711   : > { %v999_v52 = vsub.f32 %v991_v43, %v998_v51 }
 0x713   : > { %v1000_v53 = vmul.f32 1.442695, %v999_v52 }
 0x714   : > { %v1009_v54 = vpop.permute.xlu0 %1008 }
 0x715   : > { %2676 = vpow2.f32 %v1000_v53  ;;  %v1014_v55 = vsel %vm691_vm5, %v1009_v54, 0  ;;  %v1429_v54 = vld [vmem:[#allocation3] sm:$0xf0] }
 0x716   : > { %2477 = vmatpush3.bf16.msra.mxu0 %v1014_v55  ;;  %v3037_v55 = vrot.slane %v1429_v54, 4 }
 0x717   : > { %2488 = vmatprep.subr.bf16.mxu0 %v2766_v20 }
 0x718   : > { %v1110_v6 = vpop.permute.xlu0 %1109 }
 0x71f   : > { %v2677_v56 = vpop.eup %2676 }
 0x720   : > { %v1002_v57 = vsel %vm627_vm4, %v2677_v56, 0.0 }
 0x721   : > { %1003 = vadd.xlane.f32.xlu1 %v1002_v57 }
 0x732   : > { %1111 = vrot.lane.b32.xlu1 %v2988_v50, %s2771_s27 }
 0x74c   : > { %v935_v59 = vpop.f32.mrb[4].mxu0 }
 0x74d   : > { %v941_v60 = vadd.f32 %v935_v59, %v896_v58  ;;  %v2468_v61 = vpop.f32.mrb[5].mxu0 }
 0x74e   : > { %v938_v62 = vpop.f32.mrb[6].mxu0 }
 0x74f   : > { %942 = vst.msk [vmem:[#allocation4 + $0x8] sm:$0xff] %vm511_vm1, %v941_v60  ;;  %v2469_v63 = vpop.f32.mrb[7].mxu0 }
 0x756   : > { %v1219_v63 = vld [vmem:[#allocation4 + $0x8] sm:$0xff] }
 0x7ae   : > { %v1004_v0 = vpop.xlane.xlu1 %1003 }
 0x7af   : > { %2678 = vrcp.f32 %v1004_v0 }
 0x7b2   : > { %v1112_v3 = vpop.permute.xlu1 %1111 }
 0x7b3   : > { %v1117_v5 = vsel %vm627_vm4, %v1112_v3, 0 }
 0x7b9   : > { %v2679_v1 = vpop.eup %2678 }
 0x7ba   : > { %v1006_v2 = vmul.f32 %v2679_v1, %v2677_v56 }
 0x7bc   : > { %v1007_v4 = vpack.c.bf16 %v1006_v2, %v1006_v2 }
 0x7be   : > { %2479 = vmatmul.mubr.msk.bf16.vlgmr.msra.gmra.mrb[8].mxu0 %vm627_vm4, %v1007_v4 }
 0x7bf   : > { %2489 = vmatpush3.bf16.xpose.msra.mxu0 %v1117_v5  ;;  %2490 = vmatprep.mubr.msk.bf16.mxu0 %vm2767_vm2, %v2766_v20 }
 0x7c0   : > { %2500 = vmatprep.subr.bf16.mxu0 %v2766_v20 }
 0x7c6   : > { %2491 = vmatmul.mubr.msk.bf16.vlgmr.msra.gmra.mrb[12].mxu0 %vm627_vm4, %v1110_v6 }
 0x7c7   : > { %2502 = vmatprep.mubr.msk.bf16.mxu0 %vm2767_vm2, %v2766_v20  ;;  %2501 = vmatpush3.bf16.msra.mxu0 %v1062_v8 }
 0x7c8   : > { %2512 = vmatprep.subr.bf16.mxu0 %v2766_v20 }
 0x891   : > { %v1050_v9 = vpop.f32.mrb[8].mxu0 }
 0x892   : > { %v1057_v10 = vpack.c.bf16 %v1050_v9, %v1050_v9  ;;  %v2480_v11 = vpop.f32.mrb[9].mxu0 }
 0x893   : > { %v1053_v12 = vpop.f32.mrb[10].mxu0 }
 0x894   : > { %v2481_v13 = vpop.f32.mrb[11].mxu0  ;;  %2485 = vmatmul.mubr.msk.bf16.vlgmr.msra.gmra.mrb[24].mxu1 %vm627_vm4, %v1057_v10  ;;  %v1266_v12 = vld [vmem:[%s2875_s28 + $0x8] sm:$0xf] }
 0x895   : > { %2496 = vmatprep.mubr.msk.bf16.mxu1 %vm2767_vm2, %v2766_v20  ;;  %v1385_v13 = vsel %vm691_vm5, %v1266_v12, 0 }
 0x899   : > { %v1153_v14 = vpop.f32.mrb[12].mxu0 }
 0x89a   : > { %v1154_v15 = vadd.f32 %v1153_v14, %v2944_v48  ;;  %v2492_v16 = vpop.f32.mrb[13].mxu0 }
 0x89b   : > { %v1156_v17 = vpop.f32.mrb[14].mxu0 }
 0x89c   : > { %v2493_v18 = vpop.f32.mrb[15].mxu0  ;;  %v1159_v19 = vsel %vm627_vm4, %v1154_v15, -inf }
 0x89d   : > { %1160 = vmax.xlane.f32.xlu1 %v1159_v19 }
 0x8ae   : > { %1271 = vrot.lane.b32.xlu1 %v1267_v21, %s2773_s19 }
 0x8b2   : > { %1269 = vrot.lane.b32.xlu1 %v1267_v21, %s2774_s30 }
 0x92a   : > { %v1161_v22 = vpop.xlane.xlu1 %1160 }
 0x92b   : > { %v1162_v23 = vsub.f32 %v1154_v15, %v1161_v22 }
 0x92d   : > { %v1163_v24 = vmul.f32 1.442695, %v1162_v23 }
 0x92e   : > { %v1272_v38 = vpop.permute.xlu1 %1271 }
 0x92f   : > { %2680 = vpow2.f32 %v1163_v24  ;;  %v1277_v40 = vsel %vm627_vm4, %v1272_v38, 0 }
 0x932   : > { %v1270_v41 = vpop.permute.xlu1 %1269 }
 0x939   : > { %v2681_v25 = vpop.eup %2680 }
 0x93a   : > { %v1165_v26 = vsel %vm627_vm4, %v2681_v25, 0.0 }
 0x93b   : > { %1166 = vadd.xlane.f32.xlu0 %v1165_v26  ;;  %v1590_v26 = vld [vmem:[#allocation3] sm:$0xf] }
 0x951   : > { %1171 = vrot.lane.b32.xlu0 %v2988_v50, %s2772_s16 }
 0x967   : > { %v1098_v28 = vpop.f32.mrb[24].mxu1 }
 0x968   : > { %v1104_v29 = vadd.f32 %v1098_v28, %v1056_v27  ;;  %v2486_v30 = vpop.f32.mrb[25].mxu1 }
 0x969   : > { %v1101_v31 = vpop.f32.mrb[26].mxu1 }
 0x96a   : > { %1105 = vst.msk [vmem:[#allocation4] sm:$0xff] %vm511_vm1, %v1104_v29  ;;  %v2487_v32 = vpop.f32.mrb[27].mxu1 }
 0x971   : > { %v1379_v32 = vld [vmem:[#allocation4] sm:$0xff] }
 0x9c8   : > { %v1167_v33 = vpop.xlane.xlu0 %1166 }
 0x9c9   : > { %2682 = vrcp.f32 %v1167_v33 }
 0x9cc   : > { %v1172_v34 = vpop.permute.xlu0 %1171 }
 0x9cd   : > { %v1177_v35 = vsel %vm691_vm5, %v1172_v34, 0 }
 0x9ce   : > { %2495 = vmatpush3.bf16.msra.mxu1 %v1177_v35 }
 0x9cf   : > { %2506 = vmatprep.subr.bf16.mxu1 %v2766_v20 }
 0x9d3   : > { %v2683_v36 = vpop.eup %2682 }
 0x9d4   : > { %v1169_v37 = vmul.f32 %v2683_v36, %v2681_v25 }
 0x9d6   : > { %v1170_v39 = vpack.c.bf16 %v1169_v37, %v1169_v37 }
 0x9d8   : > { %2497 = vmatmul.mubr.msk.bf16.vlgmr.msra.gmra.mrb[28].mxu1 %vm627_vm4, %v1170_v39 }
 0x9d9   : > { %2507 = vmatpush3.bf16.xpose.msra.mxu1 %v1277_v40  ;;  %2508 = vmatprep.mubr.msk.bf16.mxu1 %vm2767_vm2, %v2766_v20 }
 0x9da   : > { %2518 = vmatprep.subr.bf16.mxu1 %v2766_v20 }
 0x9e0   : > { %2509 = vmatmul.mubr.msk.bf16.vlgmr.msra.gmra.mrb[32].mxu1 %vm627_vm4, %v1270_v41 }
 0x9e1   : > { %2520 = vmatprep.mubr.msk.bf16.mxu1 %vm2767_vm2, %v2766_v20  ;;  %2519 = vmatpush3.bf16.msra.mxu1 %v1385_v13 }
 0x9e2   : > { %2530 = vmatprep.subr.bf16.mxu1 %v2766_v20 }
 0xaab   : > { %v1213_v42 = vpop.f32.mrb[28].mxu1 }
 0xaac   : > { %v1220_v43 = vpack.c.bf16 %v1213_v42, %v1213_v42  ;;  %v2498_v44 = vpop.f32.mrb[29].mxu1 }
 0xaad   : > { %v1216_v45 = vpop.f32.mrb[30].mxu1 }
 0xaae   : > { %v2499_v46 = vpop.f32.mrb[31].mxu1  ;;  %2503 = vmatmul.mubr.msk.bf16.vlgmr.msra.gmra.mrb[16].mxu0 %vm627_vm4, %v1220_v43 }
 0xaaf   : > { %2514 = vmatprep.mubr.msk.bf16.mxu0 %vm2767_vm2, %v2766_v20 }
 0xab3   : > { %v1313_v47 = vpop.f32.mrb[32].mxu1 }
 0xab4   : > { %v1314_v49 = vadd.f32 %v1313_v47, %v2944_v48  ;;  %v2510_v50 = vpop.f32.mrb[33].mxu1 }
 0xab5   : > { %v1316_v51 = vpop.f32.mrb[34].mxu1 }
 0xab6   : > { %v2511_v52 = vpop.f32.mrb[35].mxu1  ;;  %v1319_v53 = vsel %vm627_vm4, %v1314_v49, -inf }
 0xab7   : > { %1320 = vmax.xlane.f32.xlu0 %v1319_v53 }
 0xacd   : > { %1331 = vrot.lane.b32.xlu0 %v1267_v21, %s2775_s12 }
 0xad1   : > { %1432 = vrot.lane.b32.xlu0 %v3037_v55, %s2774_s30 }
 0xb44   : > { %v1321_v56 = vpop.xlane.xlu0 %1320 }
 0xb45   : > { %v1322_v57 = vsub.f32 %v1314_v49, %v1321_v56 }
 0xb47   : > { %v1323_v58 = vmul.f32 1.442695, %v1322_v57 }
 0xb48   : > { %v1332_v59 = vpop.permute.xlu0 %1331 }
 0xb49   : > { %2684 = vpow2.f32 %v1323_v58  ;;  %v1337_v60 = vsel %vm691_vm5, %v1332_v59, 0  ;;  %v1752_v59 = vld [vmem:[#allocation3] sm:$0xf0] }
 0xb4a   : > { %2513 = vmatpush3.bf16.msra.mxu0 %v1337_v60  ;;  %v1754_v60 = vrot.slane %v1752_v59, 4 }
 0xb4b   : > { %2524 = vmatprep.subr.bf16.mxu0 %v2766_v20 }
 0xb4c   : > { %v1433_v11 = vpop.permute.xlu0 %1432 }
 0xb53   : > { %v2685_v61 = vpop.eup %2684 }
 0xb54   : > { %v1325_v62 = vsel %vm627_vm4, %v2685_v61, 0.0 }
 0xb55   : > { %1326 = vadd.xlane.f32.xlu1 %v1325_v62 }
 0xb66   : > { %1434 = vrot.lane.b32.xlu1 %v3037_v55, %s2773_s19 }
 0xb81   : > { %v1258_v0 = vpop.f32.mrb[16].mxu0 }
 0xb82   : > { %v1264_v1 = vadd.f32 %v1258_v0, %v1219_v63  ;;  %v2504_v2 = vpop.f32.mrb[17].mxu0 }
 0xb83   : > { %v1261_v3 = vpop.f32.mrb[18].mxu0 }
 0xb84   : > { %1265 = vst.msk [vmem:[#allocation4 + $0x8] sm:$0xff] %vm511_vm1, %v1264_v1  ;;  %v2505_v4 = vpop.f32.mrb[19].mxu0 }
 0xb8b   : > { %v1542_v4 = vld [vmem:[#allocation4 + $0x8] sm:$0xff] }
 0xbe2   : > { %v1327_v5 = vpop.xlane.xlu1 %1326 }
 0xbe3   : > { %2686 = vrcp.f32 %v1327_v5 }
 0xbe6   : > { %v1435_v8 = vpop.permute.xlu1 %1434 }
 0xbe7   : > { %v1440_v10 = vsel %vm627_vm4, %v1435_v8, 0 }
 0xbed   : > { %v2687_v6 = vpop.eup %2686 }
 0xbee   : > { %v1329_v7 = vmul.f32 %v2687_v6, %v2685_v61 }
 0xbf0   : > { %v1330_v9 = vpack.c.bf16 %v1329_v7, %v1329_v7 }
 0xbf2   : > { %2515 = vmatmul.mubr.msk.bf16.vlgmr.msra.gmra.mrb[20].mxu0 %vm627_vm4, %v1330_v9 }
 0xbf3   : > { %2525 = vmatpush3.bf16.xpose.msra.mxu0 %v1440_v10  ;;  %2526 = vmatprep.mubr.msk.bf16.mxu0 %vm2767_vm2, %v2766_v20 }
 0xbf4   : > { %2536 = vmatprep.subr.bf16.mxu0 %v2766_v20 }
 0xbfa   : > { %2527 = vmatmul.mubr.msk.bf16.vlgmr.msra.gmra.mrb[24].mxu0 %vm627_vm4, %v1433_v11 }
 0xbfb   : > { %2538 = vmatprep.mubr.msk.bf16.mxu0 %vm2767_vm2, %v2766_v20  ;;  %2537 = vmatpush3.bf16.msra.mxu0 %v1385_v13 }
 0xbfc   : > { %2548 = vmatprep.subr.bf16.mxu0 %v2766_v20 }
 0xcc5   : > { %v1373_v14 = vpop.f32.mrb[20].mxu0 }
 0xcc6   : > { %v1380_v15 = vpack.c.bf16 %v1373_v14, %v1373_v14  ;;  %v2516_v16 = vpop.f32.mrb[21].mxu0 }
 0xcc7   : > { %v1376_v17 = vpop.f32.mrb[22].mxu0 }
 0xcc8   : > { %v2517_v18 = vpop.f32.mrb[23].mxu0  ;;  %2521 = vmatmul.mubr.msk.bf16.vlgmr.msra.gmra.mrb[36].mxu1 %vm627_vm4, %v1380_v15  ;;  %v1589_v17 = vld [vmem:[%s2875_s28 + $0xc] sm:$0xf] }
 0xcc9   : > { %2532 = vmatprep.mubr.msk.bf16.mxu1 %vm2767_vm2, %v2766_v20  ;;  %v1708_v18 = vsel %vm691_vm5, %v1589_v17, 0 }
 0xccd   : > { %v1476_v19 = vpop.f32.mrb[24].mxu0 }
 0xcce   : > { %v1477_v21 = vadd.f32 %v1476_v19, %v2944_v48  ;;  %v2528_v22 = vpop.f32.mrb[25].mxu0 }
 0xccf   : > { %v1479_v23 = vpop.f32.mrb[26].mxu0 }
 0xcd0   : > { %v2529_v24 = vpop.f32.mrb[27].mxu0  ;;  %v1482_v25 = vsel %vm627_vm4, %v1477_v21, -inf }
 0xcd1   : > { %1483 = vmax.xlane.f32.xlu1 %v1482_v25 }
 0xce2   : > { %1594 = vrot.lane.b32.xlu1 %v1590_v26, %s2776_s2 }
 0xce6   : > { %1592 = vrot.lane.b32.xlu1 %v1590_v26, %s2777_s4 }
 0xd5e   : > { %v1484_v27 = vpop.xlane.xlu1 %1483 }
 0xd5f   : > { %v1485_v28 = vsub.f32 %v1477_v21, %v1484_v27 }
 0xd61   : > { %v1486_v29 = vmul.f32 1.442695, %v1485_v28 }
 0xd62   : > { %v1595_v43 = vpop.permute.xlu1 %1594 }
 0xd63   : > { %2688 = vpow2.f32 %v1486_v29  ;;  %v1600_v45 = vsel %vm627_vm4, %v1595_v43, 0 }
 0xd66   : > { %v1593_v46 = vpop.permute.xlu1 %1592 }
 0xd6d   : > { %v2689_v30 = vpop.eup %2688 }
 0xd6e   : > { %v1488_v31 = vsel %vm627_vm4, %v2689_v30, 0.0 }
 0xd6f   : > { %1489 = vadd.xlane.f32.xlu0 %v1488_v31 }
 0xd85   : > { %1494 = vrot.lane.b32.xlu0 %v3037_v55, %s2775_s12 }
 0xd9b   : > { %v1421_v33 = vpop.f32.mrb[36].mxu1 }
 0xd9c   : > { %v1427_v34 = vadd.f32 %v1421_v33, %v1379_v32  ;;  %v2522_v35 = vpop.f32.mrb[37].mxu1 }
 0xd9d   : > { %v1424_v36 = vpop.f32.mrb[38].mxu1 }
 0xd9e   : > { %1428 = vst.msk [vmem:[#allocation4] sm:$0xff] %vm511_vm1, %v1427_v34  ;;  %v2523_v37 = vpop.f32.mrb[39].mxu1 }
 0xda5   : > { %v1702_v36 = vld [vmem:[#allocation4] sm:$0xff] }
 0xdfc   : > { %v1490_v38 = vpop.xlane.xlu0 %1489 }
 0xdfd   : > { %2690 = vrcp.f32 %v1490_v38 }
 0xe00   : > { %v1495_v39 = vpop.permute.xlu0 %1494 }
 0xe01   : > { %v1500_v40 = vsel %vm691_vm5, %v1495_v39, 0 }
 0xe02   : > { %2531 = vmatpush3.bf16.msra.mxu1 %v1500_v40 }
 0xe03   : > { %2542 = vmatprep.subr.bf16.mxu1 %v2766_v20 }
 0xe07   : > { %v2691_v41 = vpop.eup %2690 }
 0xe08   : > { %v1492_v42 = vmul.f32 %v2691_v41, %v2689_v30 }
 0xe0a   : > { %v1493_v44 = vpack.c.bf16 %v1492_v42, %v1492_v42 }
 0xe0c   : > { %2533 = vmatmul.mubr.msk.bf16.vlgmr.msra.gmra.mrb[40].mxu1 %vm627_vm4, %v1493_v44 }
 0xe0d   : > { %2543 = vmatpush3.bf16.xpose.msra.mxu1 %v1600_v45  ;;  %2544 = vmatprep.mubr.msk.bf16.mxu1 %vm2767_vm2, %v2766_v20 }
 0xe0e   : > { %2554 = vmatprep.subr.bf16.mxu1 %v2766_v20 }
 0xe14   : > { %2545 = vmatmul.mubr.msk.bf16.vlgmr.msra.gmra.mrb[44].mxu1 %vm627_vm4, %v1593_v46 }
 0xe15   : > { %2556 = vmatprep.mubr.msk.bf16.mxu1 %vm2767_vm2, %v2766_v20  ;;  %2555 = vmatpush3.bf16.msra.mxu1 %v1708_v18 }
 0xe16   : > { %2566 = vmatprep.subr.bf16.mxu1 %v2766_v20 }
 0xedf   : > { %v1536_v47 = vpop.f32.mrb[40].mxu1 }
 0xee0   : > { %v1543_v49 = vpack.c.bf16 %v1536_v47, %v1536_v47  ;;  %v2534_v50 = vpop.f32.mrb[41].mxu1 }
 0xee1   : > { %v1539_v51 = vpop.f32.mrb[42].mxu1 }
 0xee2   : > { %v2535_v52 = vpop.f32.mrb[43].mxu1  ;;  %2539 = vmatmul.mubr.msk.bf16.vlgmr.msra.gmra.mrb[28].mxu0 %vm627_vm4, %v1543_v49 }
 0xee3   : > { %2550 = vmatprep.mubr.msk.bf16.mxu0 %vm2767_vm2, %v2766_v20 }
 0xee7   : > { %v1636_v53 = vpop.f32.mrb[44].mxu1 }
 0xee8   : > { %v1637_v54 = vadd.f32 %v1636_v53, %v2944_v48  ;;  %v2546_v55 = vpop.f32.mrb[45].mxu1 }
 0xee9   : > { %v1639_v56 = vpop.f32.mrb[46].mxu1 }
 0xeea   : > { %v2547_v57 = vpop.f32.mrb[47].mxu1  ;;  %v1642_v58 = vsel %vm627_vm4, %v1637_v54, -inf }
 0xeeb   : > { %1643 = vmax.xlane.f32.xlu0 %v1642_v58 }
 0xf01   : > { %1654 = vrot.lane.b32.xlu0 %v1590_v26, %s2778_s22 }
 0xf05   : > { %1755 = vrot.lane.b32.xlu0 %v1754_v60, %s2777_s4 }
 0xf78   : > { %v1644_v61 = vpop.xlane.xlu0 %1643 }
 0xf79   : > { %v1645_v62 = vsub.f32 %v1637_v54, %v1644_v61 }
 0xf7b   : > { %v1646_v63 = vmul.f32 1.442695, %v1645_v62 }
 0xf7c   : > { %v1655_v0 = vpop.permute.xlu0 %1654 }
 0xf7d   : > { %2692 = vpow2.f32 %v1646_v63  ;;  %v1660_v1 = vsel %vm691_vm5, %v1655_v0, 0 }
 0xf7e   : > { %2549 = vmatpush3.bf16.msra.mxu0 %v1660_v1 }
 0xf7f   : > { %2560 = vmatprep.subr.bf16.mxu0 %v2766_v20 }
 0xf80   : > { %v1756_v16 = vpop.permute.xlu0 %1755 }
 0xf87   : > { %v2693_v2 = vpop.eup %2692 }
 0xf88   : > { %v1648_v3 = vsel %vm627_vm4, %v2693_v2, 0.0 }
 0xf89   : > { %1649 = vadd.xlane.f32.xlu1 %v1648_v3 }
 0xf9a   : > { %1757 = vrot.lane.b32.xlu1 %v1754_v60, %s2776_s2 }
 0xfb5   : > { %v1581_v5 = vpop.f32.mrb[28].mxu0 }
 0xfb6   : > { %v1587_v6 = vadd.f32 %v1581_v5, %v1542_v4  ;;  %v2540_v7 = vpop.f32.mrb[29].mxu0 }
 0xfb7   : > { %v1584_v8 = vpop.f32.mrb[30].mxu0 }
 0xfb8   : > { %1588 = vst.msk [vmem:[#allocation4 + $0x8] sm:$0xff] %vm511_vm1, %v1587_v6  ;;  %v2541_v9 = vpop.f32.mrb[31].mxu0 }
 0xfb9   : > { %v2654_v9 = vld [vmem:[%s2884_s17] sm:$0xff]  }
 0xfbf   : > { %v1865_v56 = vld [vmem:[#allocation4 + $0x8] sm:$0xff] }
0x1016   : > { %v1650_v10 = vpop.xlane.xlu1 %1649 }
0x1017   : > { %2694 = vrcp.f32 %v1650_v10  ;;  %v2655_v10 = vld [vmem:[%s2884_s17 + $0x8] sm:$0xff]  }
0x101a   : > { %v1758_v13 = vpop.permute.xlu1 %1757 }
0x101b   : > { %v1763_v15 = vsel %vm627_vm4, %v1758_v13, 0 }
0x1021   : > { %v2695_v11 = vpop.eup %2694 }
0x1022   : > { %v1652_v12 = vmul.f32 %v2695_v11, %v2693_v2 }
0x1024   : > { %v1653_v14 = vpack.c.bf16 %v1652_v12, %v1652_v12 }
0x1026   : > { %2551 = vmatmul.mubr.msk.bf16.vlgmr.msra.gmra.mrb[32].mxu0 %vm627_vm4, %v1653_v14 }
0x1027   : > { %2561 = vmatpush3.bf16.xpose.msra.mxu0 %v1763_v15  ;;  %2562 = vmatprep.mubr.msk.bf16.mxu0 %vm2767_vm2, %v2766_v20 }
0x1028   : > { %2572 = vmatprep.subr.bf16.mxu0 %v2766_v20 }
0x102e   : > { %2563 = vmatmul.mubr.msk.bf16.vlgmr.msra.gmra.mrb[36].mxu0 %vm627_vm4, %v1756_v16 }
0x102f   : > { %2574 = vmatprep.mubr.msk.bf16.mxu0 %vm2767_vm2, %v2766_v20  ;;  %2573 = vmatpush3.bf16.msra.mxu0 %v1708_v18 }
0x1030   : > { %2586 = vmatprep.subr.bf16.mxu0 %v2766_v20 }
0x10f9   : > { %v1696_v19 = vpop.f32.mrb[32].mxu0 }
0x10fa   : > { %v1703_v21 = vpack.c.bf16 %v1696_v19, %v1696_v19  ;;  %v2552_v22 = vpop.f32.mrb[33].mxu0 }
0x10fb   : > { %v1699_v23 = vpop.f32.mrb[34].mxu0 }
0x10fc   : > { %v2553_v24 = vpop.f32.mrb[35].mxu0  ;;  %2557 = vmatmul.mubr.msk.bf16.vlgmr.msra.gmra.mrb[48].mxu1 %vm627_vm4, %v1703_v21  ;;  %v2656_v23 = vld [vmem:[%s2894_s26] sm:$0xff]  }
0x10fd   : > { %2568 = vmatprep.mubr.msk.bf16.mxu1 %vm2767_vm2, %v2766_v20  ;;  %v2657_v24 = vld [vmem:[%s2894_s26 + $0x8] sm:$0xff]  }
0x1101   : > { %v1799_v25 = vpop.f32.mrb[36].mxu0 }
0x1102   : > { %v1800_v26 = vadd.f32 %v1799_v25, %v2944_v48  ;;  %v2564_v27 = vpop.f32.mrb[37].mxu0  ;;  %v2658_v25 = vld [vmem:[%s2894_s26 + $0x10] sm:$0xff]  }
0x1103   : > { %v1802_v28 = vpop.f32.mrb[38].mxu0  ;;  %v2660_v27 = vld [vmem:[%s2894_s26 + $0x20] sm:$0xff]  }
0x1104   : > { %v2565_v29 = vpop.f32.mrb[39].mxu0  ;;  %v1805_v30 = vsel %vm627_vm4, %v1800_v26, -inf  ;;  %v2661_v28 = vld [vmem:[%s2894_s26 + $0x28] sm:$0xff]  }
0x1105   : > { %1806 = vmax.xlane.f32.xlu1 %v1805_v30  ;;  %v2662_v29 = vld [vmem:[%s2894_s26 + $0x30] sm:$0xff]   ;;  %v2663_v30 = vld [vmem:[%s2894_s26 + $0x38] sm:$0xff]  }
0x1192   : > { %v1807_v31 = vpop.xlane.xlu1 %1806 }
0x1193   : > { %v1808_v32 = vsub.f32 %v1800_v26, %v1807_v31  ;;  %v2659_v26 = vld [vmem:[%s2894_s26 + $0x18] sm:$0xff]   ;;  %v2339_v31 = vld [vmem:[%s490_s23] ss:$0 sm:$0xff] }
0x1195   : > { %v1809_v33 = vmul.f32 1.442695, %v1808_v32 }
0x1197   : > { %2696 = vpow2.f32 %v1809_v33 }
0x11a1   : > { %v2697_v34 = vpop.eup %2696 }
0x11a2   : > { %v1811_v35 = vsel %vm627_vm4, %v2697_v34, 0.0 }
0x11a3   : > { %1812 = vadd.xlane.f32.xlu0 %v1811_v35 }
0x11b9   : > { %1817 = vrot.lane.b32.xlu0 %v1754_v60, %s2778_s22 }
0x11cf   : > { %v1744_v37 = vpop.f32.mrb[48].mxu1 }
0x11d0   : > { %v1750_v38 = vadd.f32 %v1744_v37, %v1702_v36  ;;  %v2558_v48 = vpop.f32.mrb[49].mxu1 }
0x11d1   : > { %v1747_v39 = vpop.f32.mrb[50].mxu1 }
0x11d2   : > { %1751 = vst.msk [vmem:[#allocation4] sm:$0xff] %vm511_vm1, %v1750_v38  ;;  %v2559_v40 = vpop.f32.mrb[51].mxu1 }
0x11d9   : > { %v3112_v41 = vld [vmem:[#allocation4] sm:$0xff] }
0x11da   : > { %v1914_v42 = vsel %vm511_vm1, %v3112_v41, 0.0 }
0x11db   : > { %1915 = vadd.xlane.f32.xlu1 %v1914_v42 }
0x1230   : > { %v1813_v43 = vpop.xlane.xlu0 %1812 }
0x1231   : > { %2698 = vrcp.f32 %v1813_v43 }
0x1234   : > { %v1818_v44 = vpop.permute.xlu0 %1817 }
0x1235   : > { %v1823_v45 = vsel %vm691_vm5, %v1818_v44, 0 }
0x1236   : > { %2567 = vmatpush3.bf16.msra.mxu1 %v1823_v45 }
0x1237   : > { %2578 = vmatprep.subr.bf16.mxu1 %v2766_v20 }
0x123b   : > { %v2699_v46 = vpop.eup %2698 }
0x123c   : > { %v1815_v47 = vmul.f32 %v2699_v46, %v2697_v34 }
0x123e   : > { %v1816_v49 = vpack.c.bf16 %v1815_v47, %v1815_v47 }
0x1240   : > { %2569 = vmatmul.mubr.msk.bf16.vlgmr.msra.gmra.mrb[52].mxu1 %vm627_vm4, %v1816_v49 }
0x1241   : > { %2582 = vmatprep.mubr.msk.bf16.mxu1 %vm2767_vm2, %v2766_v20  ;;  %2579 = vmatpush3.bf16.msra.mxu1 %v2654_v9 }
0x1242   : > { %2580 = vmatprep.subr.bf16.mxu1 %v2766_v20 }
0x1245   : > { %2581 = vmatpush3.bf16.msra.mxu1 %v2655_v10 }
0x1268   : > { %v1916_v55 = vpop.xlane.xlu1 %1915 }
0x1269   : > { %v1920_v61 = vmul.f32 0.03125, %v1916_v55 }
0x126b   : > { %v1922_v63 = vsub.f32 %v3112_v41, %v1920_v61 }
0x126d   : > { %v1924_v2 = vmul.f32 %v1922_v63, %v1922_v63 }
0x126f   : > { %v1926_v3 = vsel %vm511_vm1, %v1924_v2, 0.0 }
0x1313   : > { %v1859_v50 = vpop.f32.mrb[52].mxu1 }
0x1314   : > { %v1866_v51 = vpack.c.bf16 %v1859_v50, %v1859_v50  ;;  %v2570_v52 = vpop.f32.mrb[53].mxu1 }
0x1315   : > { %v1862_v53 = vpop.f32.mrb[54].mxu1 }
0x1316   : > { %v2571_v54 = vpop.f32.mrb[55].mxu1  ;;  %2575 = vmatmul.mubr.msk.bf16.vlgmr.msra.gmra.mrb[40].mxu0 %vm627_vm4, %v1866_v51  ;;  %v2345_v51 = vld [vmem:[%s498_s29] ss:$0 sm:$0xff] }
0x1317   : > { %2602 = vmatprep.mubr.msk.bf16.mxu0 %vm2767_vm2, %v2766_v20  ;;  %2587 = vmatpush3.bf16.msra.mxu0 %v2656_v23 }
0x1318   : > { %2588 = vmatprep.subr.bf16.mxu0 %v2766_v20 }
0x131b   : > { %2589 = vmatpush3.bf16.msra.mxu0 %v2657_v24 }
0x131c   : > { %2590 = vmatprep.subr.bf16.mxu0 %v2766_v20 }
0x131f   : > { %2591 = vmatpush3.bf16.msra.mxu0 %v2658_v25 }
0x1320   : > { %2592 = vmatprep.subr.bf16.mxu0 %v2766_v20 }
0x1323   : > { %2593 = vmatpush3.bf16.msra.mxu0 %v2659_v26 }
0x1324   : > { %2594 = vmatprep.subr.bf16.mxu0 %v2766_v20 }
0x1327   : > { %2595 = vmatpush3.bf16.msra.mxu0 %v2660_v27 }
0x1328   : > { %2596 = vmatprep.subr.bf16.mxu0 %v2766_v20 }
0x132b   : > { %2597 = vmatpush3.bf16.msra.mxu0 %v2661_v28 }
0x132c   : > { %2598 = vmatprep.subr.bf16.mxu0 %v2766_v20 }
0x132f   : > { %2599 = vmatpush3.bf16.msra.mxu0 %v2662_v29 }
0x1330   : > { %2600 = vmatprep.subr.bf16.mxu0 %v2766_v20 }
0x1333   : > { %2601 = vmatpush3.bf16.msra.mxu0 %v2663_v30 }
0x13e9   : > { %v1904_v57 = vpop.f32.mrb[40].mxu0 }
0x13ea   : > { %v1910_v58 = vadd.f32 %v1904_v57, %v1865_v56  ;;  %v2576_v59 = vpop.f32.mrb[41].mxu0 }
0x13eb   : > { %v1907_v60 = vpop.f32.mrb[42].mxu0 }
0x13ec   : > { %1911 = vst.msk [vmem:[#allocation4 + $0x8] sm:$0xff] %vm511_vm1, %v1910_v58  ;;  %v2577_v62 = vpop.f32.mrb[43].mxu0 }
0x13f3   : > { %v3126_v0 = vld [vmem:[#allocation4 + $0x8] sm:$0xff] }
0x13f4   : > { %v1917_v1 = vsel %vm511_vm1, %v3126_v0, 0.0 }
0x13f5   : > { %1918 = vadd.xlane.f32.xlu1 %v1917_v1 }
0x13f9   : > { %1927 = vadd.xlane.f32.xlu1 %v1926_v3 }
0x1482   : > { %v1919_v4 = vpop.xlane.xlu1 %1918 }
0x1483   : > { %v1921_v5 = vmul.f32 0.03125, %v1919_v4 }
0x1485   : > { %v1923_v6 = vsub.f32 %v3126_v0, %v1921_v5 }
0x1486   : > { %v1928_v11 = vpop.xlane.xlu1 %1927 }
0x1487   : > { %v1925_v7 = vmul.f32 %v1923_v6, %v1923_v6  ;;  %v1932_v12 = vmul.f32 0.03125, %v1928_v11 }
0x1489   : > { %v1929_v8 = vsel %vm511_vm1, %v1925_v7, 0.0  ;;  %v1934_v13 = vadd.f32 1e-05, %v1932_v12 }
0x148a   : > { %1930 = vadd.xlane.f32.xlu1 %v1929_v8 }
0x148b   : > { %2700 = vrsqrt.f32 %v1934_v13 }
0x1495   : > { %v2701_v17 = vpop.eup %2700 }
0x1496   : > { %v1938_v19 = vmul.f32 %v2701_v17, %v1922_v63 }
0x1517   : > { %v1931_v14 = vpop.xlane.xlu1 %1930 }
0x1518   : > { %v1933_v15 = vmul.f32 0.03125, %v1931_v14 }
0x151a   : > { %v1935_v16 = vadd.f32 1e-05, %v1933_v15 }
0x151c   : > { %2702 = vrsqrt.f32 %v1935_v16 }
0x1526   : > { %v2703_v18 = vpop.eup %2702 }
0x1527   : > { %v1939_v21 = vmul.f32 %v2703_v18, %v1923_v6 }
0x1529   : > { %v1940_v22 = vpack.c.bf16 %v1939_v21, %v1938_v19 }
0x152b   : > { %2583 = vmatmul.mubr.msk.bf16.vlgmr.msra.gmra.mrb[56].mxu1 %vm511_vm1, %v1940_v22 }
0x15fe   : > { %v2001_v32 = vpop.f32.mrb[56].mxu1 }
0x15ff   : > { %v2002_v33 = vadd.f32 %v2339_v31, %v2001_v32  ;;  %v2584_v34 = vpop.f32.mrb[57].mxu1 }
0x1600   : > { %v2004_v35 = vpop.f32.mrb[58].mxu1 }
0x1601   : > { %v2343_v36 = vmul.f32 -1.702, %v2002_v33  ;;  %v2005_v37 = vadd.f32 %v2339_v31, %v2004_v35  ;;  %v2585_v38 = vpop.f32.mrb[59].mxu1 }
0x1603   : > { %v2012_v48 = vmul.f32 1.442695, %v2343_v36  ;;  %v2344_v39 = vmul.f32 -1.702, %v2005_v37 }
0x1605   : > { %2704 = vpow2.f32 %v2012_v48  ;;  %v2014_v40 = vmul.f32 1.442695, %v2344_v39 }
0x1607   : > { %2706 = vpow2.f32 %v2014_v40 }
0x160f   : > { %v2705_v20 = vpop.eup %2704 }
0x1610   : > { %v2016_v42 = vadd.f32 1.0, %v2705_v20 }
0x1611   : > { %v2707_v43 = vpop.eup %2706 }
0x1612   : > { %2708 = vrcp.f32 %v2016_v42  ;;  %v2017_v44 = vadd.f32 1.0, %v2707_v43 }
0x1614   : > { %2710 = vrcp.f32 %v2017_v44 }
0x161c   : > { %v2709_v45 = vpop.eup %2708 }
0x161d   : > { %v2022_v47 = vmul.f32 %v2709_v45, %v2002_v33 }
0x161e   : > { %v2711_v46 = vpop.eup %2710 }
0x161f   : > { %v2023_v49 = vmul.f32 %v2711_v46, %v2005_v37 }
0x1621   : > { %v2024_v50 = vpack.c.bf16 %v2023_v49, %v2022_v47 }
0x1623   : > { %2603 = vmatmul.mubr.bf16.vlgmr.msra.gmra.mrb[44].mxu0 %v2024_v50 }
0x16f6   : > { %v2130_v52 = vpop.f32.mrb[44].mxu0 }
0x16f7   : > { %v2131_v53 = vadd.f32 %v2345_v51, %v2130_v52  ;;  %v2604_v54 = vpop.f32.mrb[45].mxu0  ;;  %2144 = sbr.rel (%p2354_p6) target bundleno = 5886 (0x16fe), region = 68 }
0x16f8   : > { %v2133_v55 = vpop.f32.mrb[46].mxu0 }
0x16f9   : > { %v2137_v56 = vadd.f32 %v2131_v53, %v3112_v41  ;;  %v2134_v57 = vadd.f32 %v2345_v51, %v2133_v55  ;;  %v2605_v58 = vpop.f32.mrb[47].mxu0 }
0x16fb   : > { %2139 = vst.msk [vmem:[#allocation2] sm:$0xff] %vm511_vm1, %v2137_v56  ;;  %v2138_v59 = vadd.f32 %v2134_v57, %v3126_v0  ;;  %2145 = vst.msk [vmem:[#allocation5] sm:$0xff] (!%p2354_p6), %vm511_vm1, %v2137_v56 }
0x16fd   : > { %2140 = vst.msk [vmem:[#allocation2 + $0x8] sm:$0xff] %vm511_vm1, %v2138_v59  ;;  %2146 = vst.msk [vmem:[#allocation5 + $0x8] sm:$0xff] (!%p2354_p6), %vm511_vm1, %v2138_v59 }
0x16fe PF: > { %s3223_s18 = sadd.s32 4294967295, %s2764_s15   ;;  %s2779_s25 = smov [#allocation5]  }
0x16ff   : > { %p3171_p7 = scmp.eq.s32.totalorder %s3223_s18, 1  ;;  %s2156_s11 = sshll.u32 %s2779_s25, 4  ;;  %s2157_s11 = int_to_ptr.vmem [resolvable:$true] %s2156_s11 }
0x1700   : > { %s2712_s20 = scalar_lea.vmem %s2157_s11, 256  ;;  %p2719_p11 = scmp.lt.s32.totalorder %s2157_s11, %s2157_s11 }
0x1701   : > { %p2713_p8 = scmp.ne.s32.totalorder %s2157_s11, %s2712_s20  ;;  %p2720_p12 = scmp.lt.s32.totalorder %s2712_s20, %s2712_s20 }
0x1703   : > { %p2714_p9 = pnand %p2713_p8, %p3171_p7  ;;  %p2721_p13 = por %p2720_p12, %p2719_p11 }
0x1705   : > { %p2715_p10 = pneg %p2714_p9 }
0x1707   : > { %p2722_p0 = pnand %p2721_p13, %p2715_p10 }
0x1709   : > { %2725 = shalt.err (!%p2722_p0)
}
0x170a   : > { %s2726_s24 = scalar_lea.hbm %s3216_s10, 256 }
0x170b   : > { %p2727_p1 = scmp.ne.s32.totalorder %s3216_s10, %s2726_s24  ;;  %p2732_p4 = scmp.lt.u32.totalorder %s2726_s24, %s3216_s10 }
0x170d   : > { %p2728_p2 = pnand %p2727_p1, %p3171_p7 }
0x170f   : > { %p2729_p3 = pneg %p2728_p2 }
0x1711   : > { %p2734_p5 = pnand %p2732_p4, %p2729_p3 }
0x1713   : > { %2737 = shalt.err (!%p2734_p5)
}
0x1714   : > { %s2780_s12 = smov 128   ;;  %s2781_s2 = smov 8  }
0x1715   : > { %2607 = dma.vmem_to_hbm [thread:$0]  (%p3171_p7), %s2157_s11, 256, %s3216_s10, [#allocation6], %s2780_s12, %s2780_s12, %s2781_s2  }
0x1716   : > { %2751 = dma.done.wait (%p3171_p7), [#allocation6], 256  }
0x1717   : > { %2753 = vsyncadd (%p3171_p7), [#allocation6], 4294967040 }
0x1718 PF: > { %s21_s15 = sadd.s32 1, %s2764_s15   ;;  %s3225_s17 = sld [smem:[#allocation8_spill]] }
0x1719   : > { %p18_p6 = scmp.ge.s32.totalorder %s21_s15, 4   ;;  %s3226_s13 = smov %s2760_s14 }
0x171b   :  { %20 = sbr.rel (!%p18_p6) target bundleno = 5 (0x5), region = 120 }
0x171e   : > { %s3227_s14 = smov %s3225_s17 }
0x1722   :  { %2172 = vsyncpa [#allocation6], 1 }
0x1723   :  { %2174 = vsyncpa [#allocation6 + $0x1], 1 }

</bundles_post_ra>
